<compile_context>
chip_gen: v7x
topology: tpu7x:2x2x1
jax: 0.10.0
libtpu: 0.0.40
codegen_flags: <defaults>
</compile_context>

<pallas_src>
import functools

import jax
import jax.numpy as jnp
from jax import lax
from jax.experimental import pallas as pl
from jax.experimental.pallas import tpu as pltpu

T = 32   # growth rate t
K = 4    # bottleneck factor k


# ----------------------------------------------------------------------------
# Fused kernel: BN1+ReLU -> 1x1 conv -> (+BN2 shift)+ReLU -> 3x3 conv (pad=1)
# All tensors are channels-first with the flattened spatial axis (HW) on lanes.
# ----------------------------------------------------------------------------
def dense_node_kernel(x_ref, bn1_ref, b2_ref, w1_ref, w2_ref, o_ref,
                      a2p_ref, a2pl_ref, a2pr_ref, patches_ref,
                      *, width, pad):
    # x_ref : (1, Cin, HW) f32     bn1_ref: (Cin, 2) f32   b2_ref: (C1, 1) f32
    # w1_ref: (C1, Cin)    f32     w2_ref : (T, 9*C1) bf16
    # o_ref : (1, T, HW)   f32
    # a2p*_ref: (C1, pad+HW+pad) bf16 scratch   patches_ref: (9*C1, HW) bf16
    hw = x_ref.shape[2]
    c1 = w1_ref.shape[0]

    # ---- BN1 + ReLU (f32, VPU) ----
    x = x_ref[0]                                                    # (Cin, HW)
    a1 = jnp.maximum(x * bn1_ref[:, 0:1] + bn1_ref[:, 1:2], 0.0)

    # ---- 1x1 conv (BN2 scale already folded into w1 rows).  K = Cin is tiny
    # at demo scale, so operands stay f32; cast to bf16 when Cin grows large.
    y1 = jnp.dot(w1_ref[...], a1, preferred_element_type=jnp.float32)  # (C1, HW)

    # ---- BN2 shift + ReLU (f32) ----
    a2 = jnp.maximum(y1 + b2_ref[...], 0.0)                            # (C1, HW)

    # ---- Two pre-masked source copies replace six per-tap selects.
    # For dx = -1 taps the only wrap reads land on SOURCE column W-1; for
    # dx = +1 taps on SOURCE column 0 -- zeroing those columns once in a copy
    # of the source is equivalent to masking every shifted tap's output.
    # Select in f32 (v5e has no bf16 VALU), cast each buffer to bf16 once.
    col = lax.broadcasted_iota(jnp.int32, (1, hw), 1) % width
    a2_l = jnp.where(col != width - 1, a2, 0.0)    # feeds all dx = -1 taps
    a2_r = jnp.where(col != 0, a2, 0.0)            # feeds all dx = +1 taps

    # ---- Padded bf16 staging buffers in persistent VMEM scratch.  The zero
    # halos are rewritten each step: a pl.when(program_id == 0) one-time init
    # would never run on the second TensorCore under the megacore split.
    zhalo = jnp.zeros((c1, pad), jnp.bfloat16)
    for buf, mid in ((a2p_ref, a2), (a2pl_ref, a2_l), (a2pr_ref, a2_r)):
        buf[:, 0:pad] = zhalo
        buf[:, pad + hw:pad + hw + pad] = zhalo
        buf[:, pad:pad + hw] = mid.astype(jnp.bfloat16)

    # ---- im2col: nine shifted full-width bf16 taps written directly into the
    # persistent (9*C1, HW) patch scratch (no concat, no live f32 taps).
    # Out-of-range rows (dy = +/-1 at image top/bottom) read the zero halo.
    src = {-1: a2pl_ref, 0: a2p_ref, 1: a2pr_ref}
    t = 0
    for dy in (-1, 0, 1):               # (ky, kx) order matches w2 flattening
        for dx in (-1, 0, 1):
            start = pad + dy * width + dx
            patches_ref[t * c1:(t + 1) * c1, :] = src[dx][:, start:start + hw]
            t += 1

    # ---- ONE big-K (K = 9*C1 = 1152) bf16 MXU matmul, f32 accumulation. ----
    o_ref[0] = jnp.dot(w2_ref[...], patches_ref[...],
                       preferred_element_type=jnp.float32)


# ----------------------------------------------------------------------------
# Wrapper: fold BN params (BN2 scale into w1), repack weights, launch kernel.
# ----------------------------------------------------------------------------
def fold_bn(gamma, beta, mean, var, eps=1e-5):
    s = gamma / jnp.sqrt(var + eps)
    b = beta - mean * s
    return s.astype(jnp.float32), b.astype(jnp.float32)


def dense_node_forward(x_nchw, params):
    # x_nchw: (N, Cin, H, W) f32 (PyTorch layout); returns (N, T, H, W) f32.
    n, cin, h, w = x_nchw.shape
    hw = h * w
    if hw % 128 != 0:
        raise ValueError("H*W must be a multiple of 128 (TPU lane width)")
    c1 = params["w1"].shape[1]
    cout = params["w2"].shape[-1]

    s1, b1 = fold_bn(params["bn1_gamma"], params["bn1_beta"],
                     params["bn1_mean"], params["bn1_var"])
    s2, b2 = fold_bn(params["bn2_gamma"], params["bn2_beta"],
                     params["bn2_mean"], params["bn2_var"])
    bn1 = jnp.stack([s1, b1], axis=1)                         # (Cin, 2)
    b2 = b2.reshape(c1, 1)                                    # (C1, 1)

    # BN2 scale commutes with the 1x1 matmul -> fold it into w1's rows.
    w1_cf = s2[:, None] * jnp.transpose(params["w1"])         # (C1, Cin) f32
    # (3, 3, C1, T) -> (T, 9*C1), flattened in (ky, kx, c) order = tap order.
    w2_cf = jnp.transpose(params["w2"].reshape(9 * c1, cout)).astype(jnp.bfloat16)

    x_flat = x_nchw.reshape(n, cin, hw)                       # free reshape

    pad = ((w + 1 + 127) // 128) * 128                        # lane-aligned halo
    padded = 2 * pad + hw

    # Per-step VMEM footprint: double-buffered I/O blocks + scratch + live f32
    # intermediates, with 2x headroom (keeps v5e's small scoped VMEM honest).
    vmem_bytes = (2 * cin * hw * 4 + 2 * cout * hw * 4
                  + 3 * c1 * padded * 2 + 9 * c1 * hw * 2
                  + 4 * c1 * hw * 4
                  + cout * 9 * c1 * 2 + c1 * cin * 4 + (1 << 20))
    vmem_limit = int(min(max(2 * vmem_bytes, 16 << 20), 64 << 20))

    kernel = functools.partial(dense_node_kernel, width=w, pad=pad)
    out = pl.pallas_call(
        kernel,
        out_shape=jax.ShapeDtypeStruct((n, cout, hw), jnp.float32),
        grid_spec=pltpu.PrefetchScalarGridSpec(
            num_scalar_prefetch=0,
            grid=(n,),   # one image per step; N=2 also fills both v7x TCs
            in_specs=[
                pl.BlockSpec((1, cin, hw), lambda i: (i, 0, 0)),
                pl.BlockSpec((cin, 2), lambda i: (0, 0)),
                pl.BlockSpec((c1, 1), lambda i: (0, 0)),
                pl.BlockSpec((c1, cin), lambda i: (0, 0)),
                pl.BlockSpec((cout, 9 * c1), lambda i: (0, 0)),
            ],
            out_specs=pl.BlockSpec((1, cout, hw), lambda i: (i, 0, 0)),
            scratch_shapes=[
                pltpu.VMEM((c1, padded), jnp.bfloat16),   # a2p (unmasked)
                pltpu.VMEM((c1, padded), jnp.bfloat16),   # a2p_left  (dx=-1)
                pltpu.VMEM((c1, padded), jnp.bfloat16),   # a2p_right (dx=+1)
                pltpu.VMEM((9 * c1, hw), jnp.bfloat16),   # im2col patches
            ],
        ),
        compiler_params=pltpu.CompilerParams(
            dimension_semantics=("parallel",),
            vmem_limit_bytes=vmem_limit),
    )(x_flat, bn1, b2, w1_cf, w2_cf)

    return out.reshape(n, cout, h, w)                         # already NCHW


# ----------------------------------------------------------------------------
# Pure-JAX reference (folded-BN inference semantics; mirrors the kernel's
# bf16-operand / f32-accumulate 3x3 matmul so the comparison is fair).
# ----------------------------------------------------------------------------
def dense_node_reference(x_nchw, params):
    x = jnp.transpose(x_nchw, (0, 2, 3, 1))                   # NHWC
    cin = x.shape[-1]
    c1 = params["w1"].shape[1]
    s1, b1 = fold_bn(params["bn1_gamma"], params["bn1_beta"],
                     params["bn1_mean"], params["bn1_var"])
    s2, b2 = fold_bn(params["bn2_gamma"], params["bn2_beta"],
                     params["bn2_mean"], params["bn2_var"])
    a1 = jnp.maximum(x * s1 + b1, 0.0)
    y1 = lax.conv_general_dilated(
        a1, params["w1"].reshape(1, 1, cin, c1),
        window_strides=(1, 1), padding="VALID",
        dimension_numbers=("NHWC", "HWIO", "NHWC"),
        precision=lax.Precision.HIGHEST)
    a2 = jnp.maximum(y1 * s2 + b2, 0.0)
    y2 = lax.conv_general_dilated(
        a2.astype(jnp.bfloat16), params["w2"].astype(jnp.bfloat16),
        window_strides=(1, 1), padding="SAME",
        dimension_numbers=("NHWC", "HWIO", "NHWC"),
        preferred_element_type=jnp.float32)
    return jnp.transpose(y2, (0, 3, 1, 2))


def make_params(key, in_channels):
    ks = jax.random.split(key, 8)
    c1 = T * K
    return {
        # BatchNorm2d(in_channels)
        "bn1_gamma": 1.0 + 0.1 * jax.random.normal(ks[0], (in_channels,), jnp.float32),
        "bn1_beta": 0.1 * jax.random.normal(ks[1], (in_channels,), jnp.float32),
        "bn1_mean": 0.1 * jax.random.normal(ks[2], (in_channels,), jnp.float32),
        "bn1_var": jnp.abs(1.0 + 0.1 * jax.random.normal(ks[3], (in_channels,), jnp.float32)),
        # Conv2d(in_channels, 128, 1, bias=False)  -> stored as (Cin, Cout)
        "w1": 0.1 * jax.random.normal(ks[4], (in_channels, c1), jnp.float32),
        # BatchNorm2d(128)
        "bn2_gamma": 1.0 + 0.1 * jax.random.normal(ks[5], (c1,), jnp.float32),
        "bn2_beta": 0.1 * jax.random.normal(ks[6], (c1,), jnp.float32),
        "bn2_mean": jnp.zeros((c1,), jnp.float32),
        "bn2_var": jnp.ones((c1,), jnp.float32),
        # Conv2d(128, 32, 3, pad=1, bias=False) -> stored HWIO (3, 3, 128, 32)
        "w2": 0.05 * jax.random.normal(ks[7], (3, 3, c1, T), jnp.float32),
    }


if __name__ == "__main__":
    key = jax.random.PRNGKey(0)
    k_x, k_p = jax.random.split(key)

    N, Cin, H, W = 2, 4, 16, 16
    x = jax.random.normal(k_x, (N, Cin, H, W), jnp.float32)
    params = make_params(k_p, Cin)

    out = jax.block_until_ready(jax.jit(dense_node_forward)(x, params))
    assert out.shape == (N, T, H, W), out.shape

    ref = jax.block_until_ready(dense_node_reference(x, params))
    # Tolerance accounts for bf16 matmul operands (f32 accumulation), folded
    # BN2 scale, and MXU accumulation-order / f32-dot precision differences.
    assert jnp.allclose(out, ref, atol=2e-2, rtol=2e-2), \
        float(jnp.max(jnp.abs(out - ref)))

    print("KERNEL_OK")
</pallas_src>

<mosaic_0001>
module attributes {stable_mosaic.version = 11 : i64} {
  func.func @dense_node_kernel(%arg0: i32, %arg1: memref<1x4x256xf32, #tpu.memory_space<vmem>>, %arg2: memref<4x2xf32, #tpu.memory_space<vmem>>, %arg3: memref<128x1xf32, #tpu.memory_space<vmem>>, %arg4: memref<128x4xf32, #tpu.memory_space<vmem>>, %arg5: memref<32x1152xbf16, #tpu.memory_space<vmem>>, %arg6: memref<1x32x256xf32, #tpu.memory_space<vmem>>, %arg7: memref<128x512xbf16, #tpu.memory_space<vmem>>, %arg8: memref<128x512xbf16, #tpu.memory_space<vmem>>, %arg9: memref<128x512xbf16, #tpu.memory_space<vmem>>, %arg10: memref<1152x256xbf16, #tpu.memory_space<vmem>>) attributes {dimension_semantics = [#tpu.dimension_semantics<parallel>], iteration_bounds = array<i64: 2>, scalar_prefetch = 0 : i64, scratch_operands = 4 : i64, tpu.core_type = #tpu.core_type<tc>, window_params = [{transform_indices = @transform_0, window_bounds = array<i64: 1, 4, 256>}, {pipeline_mode = #tpu.pipeline_mode<synchronous>, transform_indices = @transform_1, window_bounds = array<i64: 4, 2>}, {pipeline_mode = #tpu.pipeline_mode<synchronous>, transform_indices = @transform_2, window_bounds = array<i64: 128, 1>}, {pipeline_mode = #tpu.pipeline_mode<synchronous>, transform_indices = @transform_3, window_bounds = array<i64: 128, 4>}, {pipeline_mode = #tpu.pipeline_mode<synchronous>, transform_indices = @transform_4, window_bounds = array<i64: 32, 1152>}, {transform_indices = @transform_5, window_bounds = array<i64: 1, 32, 256>}]} {
    %c0 = arith.constant 0 : index
    %c0_0 = arith.constant 0 : index
    %c0_1 = arith.constant 0 : index
    %0 = vector.load %arg1[%c0, %c0_0, %c0_1] : memref<1x4x256xf32, #tpu.memory_space<vmem>>, vector<1x4x256xf32>
    %1 = vector.shape_cast %0 : vector<1x4x256xf32> to vector<4x256xf32>
    %c0_2 = arith.constant 0 : index
    %c0_3 = arith.constant 0 : index
    %2 = vector.load %arg2[%c0_2, %c0_3] : memref<4x2xf32, #tpu.memory_space<vmem>>, vector<4x1xf32>
    %3 = vector.broadcast %2 : vector<4x1xf32> to vector<4x256xf32>
    %4 = arith.mulf %1, %3 : vector<4x256xf32>
    %c0_4 = arith.constant 0 : index
    %c1 = arith.constant 1 : index
    %5 = vector.load %arg2[%c0_4, %c1] : memref<4x2xf32, #tpu.memory_space<vmem>>, vector<4x1xf32>
    %6 = vector.broadcast %5 : vector<4x1xf32> to vector<4x256xf32>
    %7 = arith.addf %4, %6 : vector<4x256xf32>
    %cst = arith.constant 0.000000e+00 : f32
    %8 = vector.broadcast %cst : f32 to vector<4x256xf32>
    %9 = arith.maximumf %7, %8 : vector<4x256xf32>
    %c0_5 = arith.constant 0 : index
    %c0_6 = arith.constant 0 : index
    %10 = vector.load %arg4[%c0_5, %c0_6] : memref<128x4xf32, #tpu.memory_space<vmem>>, vector<128x4xf32>
    %cst_7 = arith.constant dense<0.000000e+00> : vector<128x256xf32>
    %11 = tpu.matmul %10, %9, %cst_7 {dimension_numbers = #tpu.dot_dimension_numbers<[1], [0], [0], [1], [0, 0, 1, 1], [], []>} : vector<128x4xf32>, vector<4x256xf32>, vector<128x256xf32> -> vector<128x256xf32>
    %c0_8 = arith.constant 0 : index
    %c0_9 = arith.constant 0 : index
    %12 = vector.load %arg3[%c0_8, %c0_9] : memref<128x1xf32, #tpu.memory_space<vmem>>, vector<128x1xf32>
    %13 = vector.broadcast %12 : vector<128x1xf32> to vector<128x256xf32>
    %14 = arith.addf %11, %13 : vector<128x256xf32>
    %cst_10 = arith.constant 0.000000e+00 : f32
    %15 = vector.broadcast %cst_10 : f32 to vector<128x256xf32>
    %16 = arith.maximumf %14, %15 : vector<128x256xf32>
    %17 = tpu.iota {dimensions = array<i32: 1>} : vector<1x256xi32>
    %c16_i32 = arith.constant 16 : i32
    %c0_i32 = arith.constant 0 : i32
    %18 = arith.cmpi eq, %c16_i32, %c0_i32 : i32
    %c1_i32 = arith.constant 1 : i32
    %19 = arith.select %18, %c1_i32, %c16_i32 : i32
    %20 = vector.broadcast %19 : i32 to vector<1x256xi32>
    %21 = arith.remsi %17, %20 : vector<1x256xi32>
    %c0_i32_11 = arith.constant 0 : i32
    %22 = vector.broadcast %c0_i32_11 : i32 to vector<1x256xi32>
    %23 = arith.cmpi ne, %21, %22 : vector<1x256xi32>
    %c0_i32_12 = arith.constant 0 : i32
    %24 = vector.broadcast %c0_i32_12 : i32 to vector<1x256xi32>
    %25 = arith.cmpi slt, %21, %24 : vector<1x256xi32>
    %c0_i32_13 = arith.constant 0 : i32
    %26 = arith.cmpi slt, %19, %c0_i32_13 : i32
    %27 = vector.broadcast %26 : i1 to vector<1x256xi1>
    %28 = vector.broadcast %27 : vector<1x256xi1> to vector<1x256xi1>
    %29 = arith.xori %25, %28 : vector<1x256xi1>
    %30 = arith.andi %29, %23 : vector<1x256xi1>
    %31 = vector.broadcast %19 : i32 to vector<1x256xi32>
    %32 = arith.addi %21, %31 : vector<1x256xi32>
    %33 = arith.select %30, %32, %21 : vector<1x256xi1>, vector<1x256xi32>
    %c15_i32 = arith.constant 15 : i32
    %34 = vector.broadcast %c15_i32 : i32 to vector<1x256xi32>
    %35 = arith.cmpi ne, %33, %34 : vector<1x256xi32>
    %cst_14 = arith.constant 0.000000e+00 : f32
    %36 = vector.shape_cast %35 : vector<1x256xi1> to vector<1x256xi1>
    %37 = vector.broadcast %36 : vector<1x256xi1> to vector<128x256xi1>
    %38 = vector.broadcast %cst_14 : f32 to vector<128x256xf32>
    %39 = arith.select %37, %16, %38 : vector<128x256xi1>, vector<128x256xf32>
    %c0_i32_15 = arith.constant 0 : i32
    %40 = vector.broadcast %c0_i32_15 : i32 to vector<1x256xi32>
    %41 = arith.cmpi ne, %33, %40 : vector<1x256xi32>
    %cst_16 = arith.constant 0.000000e+00 : f32
    %42 = vector.shape_cast %41 : vector<1x256xi1> to vector<1x256xi1>
    %43 = vector.broadcast %42 : vector<1x256xi1> to vector<128x256xi1>
    %44 = vector.broadcast %cst_16 : f32 to vector<128x256xf32>
    %45 = arith.select %43, %16, %44 : vector<128x256xi1>, vector<128x256xf32>
    %cst_17 = arith.constant 0.000000e+00 : bf16
    %46 = vector.broadcast %cst_17 : bf16 to vector<128x128xbf16>
    %c0_18 = arith.constant 0 : index
    %c0_19 = arith.constant 0 : index
    %47 = vector.load %arg7[%c0_18, %c0_19] : memref<128x512xbf16, #tpu.memory_space<vmem>>, vector<128x128xbf16>
    tpu.vector_store %arg7[%c0_18, %c0_19], %46 {strides = array<i32>} : memref<128x512xbf16, #tpu.memory_space<vmem>>, vector<128x128xbf16>,
    %c0_20 = arith.constant 0 : index
    %c384 = arith.constant 384 : index
    %48 = vector.load %arg7[%c0_20, %c384] : memref<128x512xbf16, #tpu.memory_space<vmem>>, vector<128x128xbf16>
    tpu.vector_store %arg7[%c0_20, %c384], %46 {strides = array<i32>} : memref<128x512xbf16, #tpu.memory_space<vmem>>, vector<128x128xbf16>,
    %49 = arith.truncf %16 : vector<128x256xf32> to vector<128x256xbf16>
    %c0_21 = arith.constant 0 : index
    %c128 = arith.constant 128 : index
    %50 = vector.load %arg7[%c0_21, %c128] : memref<128x512xbf16, #tpu.memory_space<vmem>>, vector<128x256xbf16>
    tpu.vector_store %arg7[%c0_21, %c128], %49 {strides = array<i32>} : memref<128x512xbf16, #tpu.memory_space<vmem>>, vector<128x256xbf16>,
    %c0_22 = arith.constant 0 : index
    %c0_23 = arith.constant 0 : index
    %51 = vector.load %arg8[%c0_22, %c0_23] : memref<128x512xbf16, #tpu.memory_space<vmem>>, vector<128x128xbf16>
    tpu.vector_store %arg8[%c0_22, %c0_23], %46 {strides = array<i32>} : memref<128x512xbf16, #tpu.memory_space<vmem>>, vector<128x128xbf16>,
    %c0_24 = arith.constant 0 : index
    %c384_25 = arith.constant 384 : index
    %52 = vector.load %arg8[%c0_24, %c384_25] : memref<128x512xbf16, #tpu.memory_space<vmem>>, vector<128x128xbf16>
    tpu.vector_store %arg8[%c0_24, %c384_25], %46 {strides = array<i32>} : memref<128x512xbf16, #tpu.memory_space<vmem>>, vector<128x128xbf16>,
    %53 = arith.truncf %39 : vector<128x256xf32> to vector<128x256xbf16>
    %c0_26 = arith.constant 0 : index
    %c128_27 = arith.constant 128 : index
    %54 = vector.load %arg8[%c0_26, %c128_27] : memref<128x512xbf16, #tpu.memory_space<vmem>>, vector<128x256xbf16>
    tpu.vector_store %arg8[%c0_26, %c128_27], %53 {strides = array<i32>} : memref<128x512xbf16, #tpu.memory_space<vmem>>, vector<128x256xbf16>,
    %c0_28 = arith.constant 0 : index
    %c0_29 = arith.constant 0 : index
    %55 = vector.load %arg9[%c0_28, %c0_29] : memref<128x512xbf16, #tpu.memory_space<vmem>>, vector<128x128xbf16>
    tpu.vector_store %arg9[%c0_28, %c0_29], %46 {strides = array<i32>} : memref<128x512xbf16, #tpu.memory_space<vmem>>, vector<128x128xbf16>,
    %c0_30 = arith.constant 0 : index
    %c384_31 = arith.constant 384 : index
    %56 = vector.load %arg9[%c0_30, %c384_31] : memref<128x512xbf16, #tpu.memory_space<vmem>>, vector<128x128xbf16>
    tpu.vector_store %arg9[%c0_30, %c384_31], %46 {strides = array<i32>} : memref<128x512xbf16, #tpu.memory_space<vmem>>, vector<128x128xbf16>,
    %57 = arith.truncf %45 : vector<128x256xf32> to vector<128x256xbf16>
    %c0_32 = arith.constant 0 : index
    %c128_33 = arith.constant 128 : index
    %58 = vector.load %arg9[%c0_32, %c128_33] : memref<128x512xbf16, #tpu.memory_space<vmem>>, vector<128x256xbf16>
    tpu.vector_store %arg9[%c0_32, %c128_33], %57 {strides = array<i32>} : memref<128x512xbf16, #tpu.memory_space<vmem>>, vector<128x256xbf16>,
    %c0_34 = arith.constant 0 : index
    %c111 = arith.constant 111 : index
    %59 = vector.load %arg8[%c0_34, %c111] : memref<128x512xbf16, #tpu.memory_space<vmem>>, vector<128x256xbf16>
    %c0_35 = arith.constant 0 : index
    %c0_36 = arith.constant 0 : index
    %60 = vector.load %arg10[%c0_35, %c0_36] : memref<1152x256xbf16, #tpu.memory_space<vmem>>, vector<128x256xbf16>
    tpu.vector_store %arg10[%c0_35, %c0_36], %59 {strides = array<i32>} : memref<1152x256xbf16, #tpu.memory_space<vmem>>, vector<128x256xbf16>,
    %c0_37 = arith.constant 0 : index
    %c112 = arith.constant 112 : index
    %61 = vector.load %arg7[%c0_37, %c112] : memref<128x512xbf16, #tpu.memory_space<vmem>>, vector<128x256xbf16>
    %c128_38 = arith.constant 128 : index
    %c0_39 = arith.constant 0 : index
    %62 = vector.load %arg10[%c128_38, %c0_39] : memref<1152x256xbf16, #tpu.memory_space<vmem>>, vector<128x256xbf16>
    tpu.vector_store %arg10[%c128_38, %c0_39], %61 {strides = array<i32>} : memref<1152x256xbf16, #tpu.memory_space<vmem>>, vector<128x256xbf16>,
    %c0_40 = arith.constant 0 : index
    %c113 = arith.constant 113 : index
    %63 = vector.load %arg9[%c0_40, %c113] : memref<128x512xbf16, #tpu.memory_space<vmem>>, vector<128x256xbf16>
    %c256 = arith.constant 256 : index
    %c0_41 = arith.constant 0 : index
    %64 = vector.load %arg10[%c256, %c0_41] : memref<1152x256xbf16, #tpu.memory_space<vmem>>, vector<128x256xbf16>
    tpu.vector_store %arg10[%c256, %c0_41], %63 {strides = array<i32>} : memref<1152x256xbf16, #tpu.memory_space<vmem>>, vector<128x256xbf16>,
    %c0_42 = arith.constant 0 : index
    %c127 = arith.constant 127 : index
    %65 = vector.load %arg8[%c0_42, %c127] : memref<128x512xbf16, #tpu.memory_space<vmem>>, vector<128x256xbf16>
    %c384_43 = arith.constant 384 : index
    %c0_44 = arith.constant 0 : index
    %66 = vector.load %arg10[%c384_43, %c0_44] : memref<1152x256xbf16, #tpu.memory_space<vmem>>, vector<128x256xbf16>
    tpu.vector_store %arg10[%c384_43, %c0_44], %65 {strides = array<i32>} : memref<1152x256xbf16, #tpu.memory_space<vmem>>, vector<128x256xbf16>,
    %c0_45 = arith.constant 0 : index
    %c128_46 = arith.constant 128 : index
    %67 = vector.load %arg7[%c0_45, %c128_46] : memref<128x512xbf16, #tpu.memory_space<vmem>>, vector<128x256xbf16>
    %c512 = arith.constant 512 : index
    %c0_47 = arith.constant 0 : index
    %68 = vector.load %arg10[%c512, %c0_47] : memref<1152x256xbf16, #tpu.memory_space<vmem>>, vector<128x256xbf16>
    tpu.vector_store %arg10[%c512, %c0_47], %67 {strides = array<i32>} : memref<1152x256xbf16, #tpu.memory_space<vmem>>, vector<128x256xbf16>,
    %c0_48 = arith.constant 0 : index
    %c129 = arith.constant 129 : index
    %69 = vector.load %arg9[%c0_48, %c129] : memref<128x512xbf16, #tpu.memory_space<vmem>>, vector<128x256xbf16>
    %c640 = arith.constant 640 : index
    %c0_49 = arith.constant 0 : index
    %70 = vector.load %arg10[%c640, %c0_49] : memref<1152x256xbf16, #tpu.memory_space<vmem>>, vector<128x256xbf16>
    tpu.vector_store %arg10[%c640, %c0_49], %69 {strides = array<i32>} : memref<1152x256xbf16, #tpu.memory_space<vmem>>, vector<128x256xbf16>,
    %c0_50 = arith.constant 0 : index
    %c143 = arith.constant 143 : index
    %71 = vector.load %arg8[%c0_50, %c143] : memref<128x512xbf16, #tpu.memory_space<vmem>>, vector<128x256xbf16>
    %c768 = arith.constant 768 : index
    %c0_51 = arith.constant 0 : index
    %72 = vector.load %arg10[%c768, %c0_51] : memref<1152x256xbf16, #tpu.memory_space<vmem>>, vector<128x256xbf16>
    tpu.vector_store %arg10[%c768, %c0_51], %71 {strides = array<i32>} : memref<1152x256xbf16, #tpu.memory_space<vmem>>, vector<128x256xbf16>,
    %c0_52 = arith.constant 0 : index
    %c144 = arith.constant 144 : index
    %73 = vector.load %arg7[%c0_52, %c144] : memref<128x512xbf16, #tpu.memory_space<vmem>>, vector<128x256xbf16>
    %c896 = arith.constant 896 : index
    %c0_53 = arith.constant 0 : index
    %74 = vector.load %arg10[%c896, %c0_53] : memref<1152x256xbf16, #tpu.memory_space<vmem>>, vector<128x256xbf16>
    tpu.vector_store %arg10[%c896, %c0_53], %73 {strides = array<i32>} : memref<1152x256xbf16, #tpu.memory_space<vmem>>, vector<128x256xbf16>,
    %c0_54 = arith.constant 0 : index
    %c145 = arith.constant 145 : index
    %75 = vector.load %arg9[%c0_54, %c145] : memref<128x512xbf16, #tpu.memory_space<vmem>>, vector<128x256xbf16>
    %c1024 = arith.constant 1024 : index
    %c0_55 = arith.constant 0 : index
    %76 = vector.load %arg10[%c1024, %c0_55] : memref<1152x256xbf16, #tpu.memory_space<vmem>>, vector<128x256xbf16>
    tpu.vector_store %arg10[%c1024, %c0_55], %75 {strides = array<i32>} : memref<1152x256xbf16, #tpu.memory_space<vmem>>, vector<128x256xbf16>,
    %c0_56 = arith.constant 0 : index
    %c0_57 = arith.constant 0 : index
    %77 = vector.load %arg5[%c0_56, %c0_57] : memref<32x1152xbf16, #tpu.memory_space<vmem>>, vector<32x1152xbf16>
    %c0_58 = arith.constant 0 : index
    %c0_59 = arith.constant 0 : index
    %78 = vector.load %arg10[%c0_58, %c0_59] : memref<1152x256xbf16, #tpu.memory_space<vmem>>, vector<1152x256xbf16>
    %cst_60 = arith.constant dense<0.000000e+00> : vector<32x256xf32>
    %79 = tpu.matmul %77, %78, %cst_60 {dimension_numbers = #tpu.dot_dimension_numbers<[1], [0], [0], [1], [0, 0, 1, 1], [], []>} : vector<32x1152xbf16>, vector<1152x256xbf16>, vector<32x256xf32> -> vector<32x256xf32>
    %c0_61 = arith.constant 0 : index
    %c0_62 = arith.constant 0 : index
    %c0_63 = arith.constant 0 : index
    %80 = vector.load %arg6[%c0_61, %c0_62, %c0_63] : memref<1x32x256xf32, #tpu.memory_space<vmem>>, vector<1x32x256xf32>
    %81 = vector.shape_cast %80 : vector<1x32x256xf32> to vector<32x256xf32>
    %82 = vector.shape_cast %79 : vector<32x256xf32> to vector<1x32x256xf32>
    tpu.vector_store %arg6[%c0_61, %c0_62, %c0_63], %82 {strides = array<i32>} : memref<1x32x256xf32, #tpu.memory_space<vmem>>, vector<1x32x256xf32>,
    return
  }
  func.func @transform_0(%arg0: i32) -> (i32, i32, i32) {
    %c0_i32 = arith.constant 0 : i32
    %c0_i32_0 = arith.constant 0 : i32
    %c0_i32_1 = arith.constant 0 : i32
    return %arg0, %c0_i32, %c0_i32_0 : i32, i32, i32
  }
  func.func @transform_1(%arg0: i32) -> (i32, i32) {
    %c0_i32 = arith.constant 0 : i32
    %c0_i32_0 = arith.constant 0 : i32
    %c0_i32_1 = arith.constant 0 : i32
    return %c0_i32, %c0_i32_0 : i32, i32
  }
  func.func @transform_2(%arg0: i32) -> (i32, i32) {
    %c0_i32 = arith.constant 0 : i32
    %c0_i32_0 = arith.constant 0 : i32
    %c0_i32_1 = arith.constant 0 : i32
    return %c0_i32, %c0_i32_0 : i32, i32
  }
  func.func @transform_3(%arg0: i32) -> (i32, i32) {
    %c0_i32 = arith.constant 0 : i32
    %c0_i32_0 = arith.constant 0 : i32
    %c0_i32_1 = arith.constant 0 : i32
    return %c0_i32, %c0_i32_0 : i32, i32
  }
  func.func @transform_4(%arg0: i32) -> (i32, i32) {
    %c0_i32 = arith.constant 0 : i32
    %c0_i32_0 = arith.constant 0 : i32
    %c0_i32_1 = arith.constant 0 : i32
    return %c0_i32, %c0_i32_0 : i32, i32
  }
  func.func @transform_5(%arg0: i32) -> (i32, i32, i32) {
    %c0_i32 = arith.constant 0 : i32
    %c0_i32_0 = arith.constant 0 : i32
    %c0_i32_1 = arith.constant 0 : i32
    return %arg0, %c0_i32, %c0_i32_0 : i32, i32, i32
  }
}

</mosaic_0001>

<bundles_post_ra>
// kernel: dense_node_forward.1
= control target key start
LH: loop header
LB: loop body
LE: loop exit
PB: predicated region body
PF: predicated region fallthrough
CT: control target
= control target key end

     0   :  { %s2990_s18 = smov 0   ;;  %s4269_s0 = inlined_call_operand.vmem [shape: f32[2,4,256], index: 0, kind: input, shape index: {}]   ;;  %s4270_s1 = inlined_call_operand.vmem [shape: f32[4,2], index: 1, kind: input, shape index: {}]   ;;  %s4271_s2 = inlined_call_operand.vmem [shape: f32[128,1], index: 2, kind: input, shape index: {}]   ;;  %s4272_s3 = inlined_call_operand.vmem [shape: f32[128,4], index: 3, kind: input, shape index: {}]   ;;  %s4273_s4 = inlined_call_operand.vmem [shape: bf16[32,1152], index: 4, kind: input, shape index: {}]   ;;  %s4274_s5 = inlined_call_operand.vmem [shape: f32[2,32,256], index: 5, kind: output, shape index: {}]  }
   0x1 LB: > { %s2638_s19 = sadd.s32 4294967295, %s2946_s18   ;;  %p2642_p0 = scmp.ge.s32.totalorder %s2946_s18, 1  ;;  %s2946_s18 = sphi %s2990_s18, %s15_s18  }
   0x2   : > { %p187_p1 = scmp.lt.s32.totalorder %s2946_s18, 3 }
   0x4   : > { %p188_p2 = pnand %p2642_p0, %p187_p1 }
   0x6   : > { %191 = sbr.rel (%p188_p2) target bundleno = 997 (0x3e5), region = 40 }
   0xd   : > { %v227_v0 = vld [vmem:[%s4270_s1] sm:$0xf]  ;;  %v4275_v1 = vmov 0   ;;  %v2949_v2 = vmov 1   ;;  %v2950_v3 = vmov 0.0   ;;  %v271_v5 = vld [vmem:[%s4271_s2 + $0x8] sm:$0xff]  ;;  %v235_v22 = vlaneseq }
   0xe   : > { %2755 = vset.pattern.permute.xlu0 %v4275_v1  ;;  %2757 = vset.pattern.permute.xlu1 %v4275_v1  ;;  %v270_v4 = vld [vmem:[%s4271_s2] sm:$0xff]  ;;  %v272_v6 = vld [vmem:[%s4271_s2 + $0x10] sm:$0xff]  ;;  %v275_v8 = vld [vmem:[%s4271_s2 + $0x28] sm:$0xff]  ;;  %s2951_s6 = smov 17   ;;  %s2952_s7 = smov 127   ;;  %vm417_vm0 = vcmask 1043456  }
   0xf   : > { %230 = vperm.xlu0 %2755, %v227_v0   ;;  %486 = vmatprep.mubr.f32.mxu0 %v2950_v3  ;;  %v274_v7 = vld [vmem:[%s4271_s2 + $0x20] sm:$0xff]  ;;  %v273_v9 = vld [vmem:[%s4271_s2 + $0x18] sm:$0xff]  ;;  %v276_v11 = vld [vmem:[%s4271_s2 + $0x30] sm:$0xff]  ;;  %s2953_s8 = smov 16   ;;  %p215_p3 = scmp.lt.s32.totalorder %s2638_s19, 1  ;;  %v236_v24 = vshrl.u32 %v235_v22, 7 }
  0x10   : > { %288 = vperm.xlu1 %2757, %v270_v4   ;;  %v277_v10 = vld [vmem:[%s4271_s2 + $0x38] sm:$0xff]  ;;  %v279_v12 = vld [vmem:[%s4271_s2 + $0x48] sm:$0xff]  ;;  %v278_v13 = vld [vmem:[%s4271_s2 + $0x40] sm:$0xff]  ;;  %v2954_v20 = vmov 839922192   ;;  %s2955_s10 = smov 113  }
  0x11   : > { %v281_v14 = vld [vmem:[%s4271_s2 + $0x58] sm:$0xff]  ;;  %v280_v15 = vld [vmem:[%s4271_s2 + $0x50] sm:$0xff]  ;;  %v283_v16 = vld [vmem:[%s4271_s2 + $0x68] sm:$0xff]  ;;  %v233_v21 = vunpack.c.l.s4 %v2954_v20  ;;  %s4360_s19 = smov (!%p215_p3, %s2638_s19), 1  ;;  %s2956_s11 = smov 15   ;;  %vm368_vm1 = vcmask 31744  }
  0x12   : > { %v282_v17 = vld [vmem:[%s4271_s2 + $0x60] sm:$0xff]  ;;  %v285_v18 = vld [vmem:[%s4271_s2 + $0x78] sm:$0xff]  ;;  %v284_v19 = vld [vmem:[%s4271_s2 + $0x70] sm:$0xff]  ;;  %s2685_s9 = sshll.u32 %s4360_s19, 3  ;;  %v616_v51 = vand.u32 127, %v235_v22  ;;  %vm1570_vm6 = vcmask 1039360  }
  0x13   : > { %2756 = vset.pattern.permute.xlu0 %v2949_v2  ;;  %v234_v23 = vunpack.c.0.s8 %v233_v21  ;;  %s219_s14 = scalar_lea.vmem %s4269_s0, %s2685_s9  ;;  %v254_v35 = vld [vmem:[%s4272_s3] sm:$0xff]  ;;  %v255_v36 = vld [vmem:[%s4272_s3 + $0x8] sm:$0xff]  ;;  %v256_v37 = vld [vmem:[%s4272_s3 + $0x10] sm:$0xff]  ;;  %vm958_vm7 = vcmask 138240   ;;  %s2958_s9 = smov 112   ;;  %vm1715_vm8 = vcmask 924672  }
  0x14   : > { %242 = vperm.xlu0 %2756, %v227_v0   ;;  %293 = vperm.xlu1 %2757, %v271_v5   ;;  %v226_v28 = vld [vmem:[%s219_s14] sm:$0xff]  ;;  %v257_v38 = vld [vmem:[%s4272_s3 + $0x18] sm:$0xff]  ;;  %v259_v40 = vld [vmem:[%s4272_s3 + $0x28] sm:$0xff]  ;;  %v617_v52 = vadd.s32 128, %v616_v51  ;;  %v622_v54 = vand.u32 15, %v616_v51  ;;  %vm1248_vm9 = vcmask 121856  }
  0x15   : > { %v237_v25 = vsub.s32 %v234_v23, %v236_v24  ;;  %v258_v39 = vld [vmem:[%s4272_s3 + $0x20] sm:$0xff]  ;;  %v260_v41 = vld [vmem:[%s4272_s3 + $0x30] sm:$0xff]  ;;  %v261_v42 = vld [vmem:[%s4272_s3 + $0x38] sm:$0xff]  ;;  %vm1103_vm10 = vcmask 130048   ;;  %vm1860_vm11 = vcmask 916480   ;;  %vm1393_vm12 = vcmask 7168  }
  0x16   : > { %v262_v43 = vld [vmem:[%s4272_s3 + $0x40] sm:$0xff]  ;;  %v263_v44 = vld [vmem:[%s4272_s3 + $0x48] sm:$0xff]  ;;  %v264_v45 = vld [vmem:[%s4272_s3 + $0x50] sm:$0xff]  ;;  %v629_v55 = vand.u32 15, %v617_v52  ;;  %vm3184_vm2 = vcmp.ne.s32.totalorder %v622_v54, 15  ;;  %vm3188_vm3 = vcmp.ne.s32.totalorder %v622_v54, 0 }
  0x17   : > { %v265_v46 = vld [vmem:[%s4272_s3 + $0x58] sm:$0xff]  ;;  %v266_v47 = vld [vmem:[%s4272_s3 + $0x60] sm:$0xff]  ;;  %v267_v48 = vld [vmem:[%s4272_s3 + $0x68] sm:$0xff]  ;;  %vm2005_vm13 = vcmask 908288   ;;  %s2686_s24 = sshll.u32 %s4360_s19, 6 }
  0x18   : > { %2758 = vset.pattern.permute.xlu0 %v4275_v1  ;;  %298 = vperm.xlu1 %2757, %v272_v6   ;;  %v268_v49 = vld [vmem:[%s4272_s3 + $0x70] sm:$0xff]  ;;  %v269_v50 = vld [vmem:[%s4272_s3 + $0x78] sm:$0xff]  ;;  %vm3192_vm4 = vcmp.ne.s32.totalorder %v629_v55, 15  ;;  %vm3196_vm5 = vcmp.ne.s32.totalorder %v629_v55, 0  ;;  %s224_s27 = scalar_lea.vmem %s4274_s5, %s2686_s24 }
  0x19   : > { %303 = vperm.xlu0 %2758, %v273_v9  }
  0x1c   : > { %308 = vperm.xlu1 %2757, %v274_v7  }
  0x1d   : > { %318 = vperm.xlu0 %2758, %v276_v11  }
  0x20   : > { %313 = vperm.xlu1 %2757, %v275_v8  }
  0x21   : > { %328 = vperm.xlu0 %2758, %v278_v13  }
  0x24   : > { %323 = vperm.xlu1 %2757, %v277_v10  }
  0x25   : > { %338 = vperm.xlu0 %2758, %v280_v15  }
  0x28   : > { %333 = vperm.xlu1 %2757, %v279_v12  }
  0x29   : > { %348 = vperm.xlu0 %2758, %v282_v17  }
  0x2c   : > { %343 = vperm.xlu1 %2757, %v281_v14  }
  0x2d   : > { %358 = vperm.xlu0 %2758, %v284_v19  }
  0x30   : > { %353 = vperm.xlu1 %2757, %v283_v16  }
  0x31   : > { %2760 = vrot.lane.b32.xlu0 %v4275_v1, %s2951_s6 }
  0x34   : > { %363 = vperm.xlu1 %2757, %v285_v18  }
  0x35   : > { %2770 = vrot.lane.b32.xlu0 %v4275_v1, %s2951_s6 }
  0x38   : > { %2765 = vrot.lane.b32.xlu1 %v4275_v1, %s2951_s6 }
  0x39   : > { %2785 = vrot.lane.b32.xlu0 %v4275_v1, %s2953_s8 }
  0x3c   : > { %2775 = vrot.lane.b32.xlu1 %v4275_v1, %s2951_s6 }
  0x3d   : > { %2795 = vrot.lane.b32.xlu0 %v4275_v1, %s2953_s8 }
  0x40   : > { %2780 = vrot.lane.b32.xlu1 %v4275_v1, %s2952_s7 }
  0x41   : > { %2805 = vrot.lane.b32.xlu0 %v4275_v1, %s2953_s8 }
  0x44   : > { %2790 = vrot.lane.b32.xlu1 %v4275_v1, %s2952_s7 }
  0x45   : > { %2815 = vrot.lane.b32.xlu0 %v4275_v1, %s2953_s8 }
  0x48   : > { %2800 = vrot.lane.b32.xlu1 %v4275_v1, %s2952_s7 }
  0x49   : > { %2825 = vrot.lane.b32.xlu0 %v4275_v1, %s2956_s11 }
  0x4c   : > { %2810 = vrot.lane.b32.xlu1 %v4275_v1, %s2952_s7 }
  0x4d   : > { %2835 = vrot.lane.b32.xlu0 %v4275_v1, %s2956_s11 }
  0x50   : > { %2820 = vrot.lane.b32.xlu1 %v4275_v1, %s2955_s10 }
  0x51   : > { %2845 = vrot.lane.b32.xlu0 %v4275_v1, %s2956_s11 }
  0x54   : > { %2830 = vrot.lane.b32.xlu1 %v4275_v1, %s2955_s10 }
  0x55   : > { %2855 = vrot.lane.b32.xlu0 %v4275_v1, %s2956_s11 }
  0x58   : > { %2840 = vrot.lane.b32.xlu1 %v4275_v1, %s2955_s10 }
  0x5c   : > { %2850 = vrot.lane.b32.xlu1 %v4275_v1, %s2955_s10 }
  0x8e   : > { %v231_v26 = vpop.permute.xlu0 %230 }
  0x8f   : > { %v238_v27 = vrot.slane %v231_v26, %v237_v25  ;;  %v289_v53 = vpop.permute.xlu1 %288 }
  0x91   : > { %v240_v30 = vmul.f32 %v238_v27, %v226_v28 }
  0x93   : > { %v243_v29 = vpop.permute.xlu0 %242  ;;  %v294_v61 = vpop.permute.xlu1 %293 }
  0x94   : > { %v250_v31 = vrot.slane %v243_v29, %v237_v25 }
  0x96   : > { %v252_v32 = vadd.f32 %v250_v31, %v240_v30 }
  0x97   : > { %v299_v13 = vpop.permute.xlu1 %298 }
  0x98   : > { %v253_v33 = vmax.f32 %v252_v32, 0.0  ;;  %v304_v28 = vpop.permute.xlu0 %303 }
  0x9a   : > { %v367_v34 = vcombine.high %v253_v33, %v253_v33 }
  0x9c   : > { %2647 = vmatprep.subr.msk.mxu0 %vm417_vm0, %v367_v34 }
  0x9d   : > { %2648 = vmatpush1.msk.msra.mxu0 %vm417_vm0, %v253_v33 }
  0x9e   : > { %2649 = vmatmul.mubr.msk.f32.vlgmr.msra.gmra.mrb[0].mxu0 %vm368_vm1, %v254_v35 }
  0x9f   : > { %492 = vmatprep.mubr.f32.mxu0 %v2950_v3 }
  0xa2   : > { %2650 = vmatmul.mubr.msk.f32.gmra.mrb[2].mxu0 %vm368_vm1, %v255_v36 }
  0xa3   : > { %498 = vmatprep.mubr.f32.mxu0 %v2950_v3 }
  0xa6   : > { %2651 = vmatmul.mubr.msk.f32.gmra.mrb[4].mxu0 %vm368_vm1, %v256_v37  ;;  %v309_v37 = vpop.permute.xlu1 %308 }
  0xa7   : > { %504 = vmatprep.mubr.f32.mxu0 %v2950_v3 }
  0xaa   : > { %2652 = vmatmul.mubr.msk.f32.gmra.mrb[6].mxu0 %vm368_vm1, %v257_v38 }
  0xab   : > { %510 = vmatprep.mubr.f32.mxu0 %v2950_v3 }
  0xae   : > { %2653 = vmatmul.mubr.msk.f32.gmra.mrb[8].mxu0 %vm368_vm1, %v258_v39 }
  0xaf   : > { %516 = vmatprep.mubr.f32.mxu0 %v2950_v3 }
  0xb2   : > { %2654 = vmatmul.mubr.msk.f32.gmra.mrb[10].mxu0 %vm368_vm1, %v259_v40 }
  0xb3   : > { %522 = vmatprep.mubr.f32.mxu0 %v2950_v3 }
  0xb6   : > { %2655 = vmatmul.mubr.msk.f32.gmra.mrb[12].mxu0 %vm368_vm1, %v260_v41 }
  0xb7   : > { %528 = vmatprep.mubr.f32.mxu0 %v2950_v3 }
  0xba   : > { %2656 = vmatmul.mubr.msk.f32.gmra.mrb[14].mxu0 %vm368_vm1, %v261_v42 }
  0xbb   : > { %534 = vmatprep.mubr.f32.mxu0 %v2950_v3 }
  0xbe   : > { %2657 = vmatmul.mubr.msk.f32.gmra.mrb[16].mxu0 %vm368_vm1, %v262_v43 }
  0xbf   : > { %540 = vmatprep.mubr.f32.mxu0 %v2950_v3 }
  0xc2   : > { %2658 = vmatmul.mubr.msk.f32.gmra.mrb[18].mxu0 %vm368_vm1, %v263_v44 }
  0xc3   : > { %546 = vmatprep.mubr.f32.mxu0 %v2950_v3 }
  0xc6   : > { %2659 = vmatmul.mubr.msk.f32.gmra.mrb[20].mxu0 %vm368_vm1, %v264_v45 }
  0xc7   : > { %552 = vmatprep.mubr.f32.mxu0 %v2950_v3 }
  0xca   : > { %2660 = vmatmul.mubr.msk.f32.gmra.mrb[22].mxu0 %vm368_vm1, %v265_v46 }
  0xcb   : > { %558 = vmatprep.mubr.f32.mxu0 %v2950_v3 }
  0xce   : > { %2661 = vmatmul.mubr.msk.f32.gmra.mrb[24].mxu0 %vm368_vm1, %v266_v47 }
  0xcf   : > { %564 = vmatprep.mubr.f32.mxu0 %v2950_v3 }
  0xd2   : > { %2662 = vmatmul.mubr.msk.f32.gmra.mrb[26].mxu0 %vm368_vm1, %v267_v48 }
  0xd3   : > { %570 = vmatprep.mubr.f32.mxu0 %v2950_v3 }
  0xd6   : > { %2663 = vmatmul.mubr.msk.f32.gmra.mrb[28].mxu0 %vm368_vm1, %v268_v49 }
  0xd7   : > { %576 = vmatprep.mubr.f32.mxu0 %v2950_v3 }
  0xda   : > { %2664 = vmatmul.mubr.msk.f32.gmra.mrb[30].mxu0 %vm368_vm1, %v269_v50 }
 0x171   : > { %v488_v56 = vpop.f32.mrb[0].mxu0 }
 0x172   : > { %v489_v57 = vadd.f32 %v488_v56, %v289_v53  ;;  %v490_v58 = vpop.f32.mrb[1].mxu0  ;;  %v314_v56 = vpop.permute.xlu1 %313 }
 0x173   : > { %v491_v62 = vadd.f32 %v490_v58, %v289_v53 }
 0x174   : > { %v583_v2 = vmax.f32 %v489_v57, 0.0 }
 0x175   : > { %v584_v3 = vmax.f32 %v491_v62, 0.0  ;;  %v494_v4 = vpop.f32.mrb[2].mxu0 }
 0x176   : > { %v495_v5 = vadd.f32 %v494_v4, %v294_v61  ;;  %v496_v6 = vpop.f32.mrb[3].mxu0  ;;  %v648_v7 = vsel %vm3184_vm2, %v583_v2, 0.0  ;;  %v686_v8 = vsel %vm3188_vm3, %v583_v2, 0.0 }
 0x177   : > { %v497_v9 = vadd.f32 %v496_v6, %v294_v61  ;;  %v687_v10 = vsel %vm3196_vm5, %v584_v3, 0.0  ;;  %v649_v11 = vsel %vm3192_vm4, %v584_v3, 0.0 }
 0x178   : > { %v585_v12 = vmax.f32 %v495_v5, 0.0 }
 0x179   : > { %v586_v14 = vmax.f32 %v497_v9, 0.0  ;;  %v500_v15 = vpop.f32.mrb[4].mxu0 }
 0x17a   : > { %v501_v16 = vadd.f32 %v500_v15, %v299_v13  ;;  %v502_v17 = vpop.f32.mrb[5].mxu0  ;;  %v3208_v18 = vpack.c.bf16 %v585_v12, %v583_v2  ;;  %v650_v19 = vsel %vm3184_vm2, %v585_v12, 0.0  ;;  %v688_v20 = vsel %vm3188_vm3, %v585_v12, 0.0 }
 0x17b   : > { %v503_v21 = vadd.f32 %v502_v17, %v299_v13  ;;  %v3214_v22 = vpack.c.bf16 %v586_v14, %v584_v3  ;;  %v3216_v23 = vpack.c.bf16 %v650_v19, %v648_v7  ;;  %v3218_v24 = vpack.c.bf16 %v688_v20, %v686_v8 }
 0x17c   : > { %v587_v25 = vmax.f32 %v501_v16, 0.0  ;;  %1057 = vrot.lane.b32.xlu0 %v3208_v18, %s2953_s8  ;;  %v689_v26 = vsel %vm3196_vm5, %v586_v14, 0.0  ;;  %v651_v27 = vsel %vm3192_vm4, %v586_v14, 0.0 }
 0x17d   : > { %v588_v29 = vmax.f32 %v503_v21, 0.0  ;;  %v506_v30 = vpop.f32.mrb[6].mxu0  ;;  %1059 = vrot.lane.b32.xlu1 %v3214_v22, %s2953_s8  ;;  %2416 = vmatprep.subr.bf16.mxu1 %v3214_v22  ;;  %v3229_v31 = vpack.c.bf16 %v689_v26, %v687_v10  ;;  %v3231_v32 = vpack.c.bf16 %v651_v27, %v649_v11  ;;  %v319_v10 = vpop.permute.xlu0 %318 }
 0x17e   : > { %v507_v33 = vadd.f32 %v506_v30, %v304_v28  ;;  %v508_v34 = vpop.f32.mrb[7].mxu0  ;;  %2417 = vmatpush1.bf16.msra.mxu1 %v3208_v18  ;;  %v652_v35 = vsel %vm3184_vm2, %v587_v25, 0.0  ;;  %v690_v36 = vsel %vm3188_vm3, %v587_v25, 0.0 }
 0x17f   : > { %v509_v38 = vadd.f32 %v508_v34, %v304_v28  ;;  %v653_v39 = vsel %vm3192_vm4, %v588_v29, 0.0  ;;  %v691_v40 = vsel %vm3196_vm5, %v588_v29, 0.0 }
 0x180   : > { %v589_v41 = vmax.f32 %v507_v33, 0.0  ;;  %912 = vrot.lane.b32.xlu0 %v3216_v23, %s2951_s6 }
 0x181   : > { %v590_v42 = vmax.f32 %v509_v38, 0.0  ;;  %v512_v43 = vpop.f32.mrb[8].mxu0  ;;  %1522 = vrot.lane.b32.xlu1 %v3218_v24, %s2952_s7 }
 0x182   : > { %v513_v44 = vadd.f32 %v512_v43, %v309_v37  ;;  %v514_v45 = vpop.f32.mrb[9].mxu0  ;;  %v3246_v46 = vpack.c.bf16 %v589_v41, %v587_v25  ;;  %v654_v47 = vsel %vm3184_vm2, %v589_v41, 0.0  ;;  %v692_v48 = vsel %vm3188_vm3, %v589_v41, 0.0 }
 0x183   : > { %v515_v49 = vadd.f32 %v514_v45, %v309_v37  ;;  %v3252_v50 = vpack.c.bf16 %v590_v42, %v588_v29  ;;  %v3254_v51 = vpack.c.bf16 %v654_v47, %v652_v35  ;;  %v3256_v52 = vpack.c.bf16 %v692_v48, %v690_v36  ;;  %v324_v29 = vpop.permute.xlu1 %323 }
 0x184   : > { %v591_v53 = vmax.f32 %v513_v44, 0.0  ;;  %1202 = vrot.lane.b32.xlu0 %v3218_v24, %s2956_s11  ;;  %v655_v54 = vsel %vm3192_vm4, %v590_v42, 0.0  ;;  %v693_v55 = vsel %vm3196_vm5, %v590_v42, 0.0  ;;  %v329_v44 = vpop.permute.xlu0 %328 }
 0x185   : > { %v592_v57 = vmax.f32 %v515_v49, 0.0  ;;  %v518_v58 = vpop.f32.mrb[10].mxu0  ;;  %2418 = vmatprep.subr.bf16.mxu1 %v3252_v50  ;;  %1667 = vrot.lane.b32.xlu1 %v3216_v23, %s2955_s10  ;;  %v3267_v61 = vpack.c.bf16 %v655_v54, %v653_v39  ;;  %v3269_v62 = vpack.c.bf16 %v693_v55, %v691_v40 }
 0x186   : > { %v519_v2 = vadd.f32 %v518_v58, %v314_v56  ;;  %v520_v3 = vpop.f32.mrb[11].mxu0  ;;  %2419 = vmatpush1.bf16.msra.mxu1 %v3246_v46  ;;  %v656_v4 = vsel %vm3184_vm2, %v591_v53, 0.0  ;;  %v694_v5 = vsel %vm3188_vm3, %v591_v53, 0.0 }
 0x187   : > { %v521_v6 = vadd.f32 %v520_v3, %v314_v56  ;;  %v657_v7 = vsel %vm3192_vm4, %v592_v57, 0.0  ;;  %v695_v8 = vsel %vm3196_vm5, %v592_v57, 0.0 }
 0x188   : > { %v593_v9 = vmax.f32 %v519_v2, 0.0  ;;  %1524 = vrot.lane.b32.xlu0 %v3229_v31, %s2952_s7 }
 0x189   : > { %v594_v11 = vmax.f32 %v521_v6, 0.0  ;;  %v524_v12 = vpop.f32.mrb[12].mxu0  ;;  %914 = vrot.lane.b32.xlu1 %v3231_v32, %s2951_s6  ;;  %v334_v6 = vpop.permute.xlu1 %333 }
 0x18a   : > { %v525_v13 = vadd.f32 %v524_v12, %v319_v10  ;;  %v526_v14 = vpop.f32.mrb[13].mxu0  ;;  %v3284_v15 = vpack.c.bf16 %v593_v9, %v591_v53  ;;  %v658_v16 = vsel %vm3184_vm2, %v593_v9, 0.0  ;;  %v696_v17 = vsel %vm3188_vm3, %v593_v9, 0.0 }
 0x18b   : > { %v527_v19 = vadd.f32 %v526_v14, %v319_v10  ;;  %v3290_v20 = vpack.c.bf16 %v594_v11, %v592_v57  ;;  %v3292_v21 = vpack.c.bf16 %v658_v16, %v656_v4  ;;  %v3294_v25 = vpack.c.bf16 %v696_v17, %v694_v5 }
 0x18c   : > { %v595_v26 = vmax.f32 %v525_v13, 0.0  ;;  %1669 = vrot.lane.b32.xlu0 %v3231_v32, %s2955_s10  ;;  %v659_v27 = vsel %vm3192_vm4, %v594_v11, 0.0  ;;  %v697_v28 = vsel %vm3196_vm5, %v594_v11, 0.0 }
 0x18d   : > { %v596_v30 = vmax.f32 %v527_v19, 0.0  ;;  %v530_v33 = vpop.f32.mrb[14].mxu0  ;;  %2420 = vmatprep.subr.bf16.mxu1 %v3290_v20  ;;  %1204 = vrot.lane.b32.xlu1 %v3229_v31, %s2956_s11  ;;  %v3305_v34 = vpack.c.bf16 %v659_v27, %v657_v7  ;;  %v3307_v35 = vpack.c.bf16 %v697_v28, %v695_v8  ;;  %v339_v27 = vpop.permute.xlu0 %338 }
 0x18e   : > { %v531_v36 = vadd.f32 %v530_v33, %v324_v29  ;;  %v532_v37 = vpop.f32.mrb[15].mxu0  ;;  %2421 = vmatpush1.bf16.msra.mxu1 %v3284_v15  ;;  %v660_v38 = vsel %vm3184_vm2, %v595_v26, 0.0  ;;  %v698_v39 = vsel %vm3188_vm3, %v595_v26, 0.0 }
 0x18f   : > { %v533_v40 = vadd.f32 %v532_v37, %v324_v29  ;;  %v699_v41 = vsel %vm3196_vm5, %v596_v30, 0.0  ;;  %v661_v42 = vsel %vm3192_vm4, %v596_v30, 0.0 }
 0x190   : > { %v597_v43 = vmax.f32 %v531_v36, 0.0  ;;  %1063 = vrot.lane.b32.xlu0 %v3246_v46, %s2953_s8 }
 0x191   : > { %v598_v45 = vmax.f32 %v533_v40, 0.0  ;;  %v536_v47 = vpop.f32.mrb[16].mxu0  ;;  %918 = vrot.lane.b32.xlu1 %v3254_v51, %s2951_s6 }
 0x192   : > { %v537_v48 = vadd.f32 %v536_v47, %v329_v44  ;;  %v538_v49 = vpop.f32.mrb[17].mxu0  ;;  %v3322_v53 = vpack.c.bf16 %v597_v43, %v595_v26  ;;  %v662_v54 = vsel %vm3184_vm2, %v597_v43, 0.0  ;;  %v700_v55 = vsel %vm3188_vm3, %v597_v43, 0.0  ;;  %v344_v47 = vpop.permute.xlu1 %343 }
 0x193   : > { %v539_v56 = vadd.f32 %v538_v49, %v329_v44  ;;  %v3328_v57 = vpack.c.bf16 %v598_v45, %v596_v30  ;;  %v3330_v58 = vpack.c.bf16 %v662_v54, %v660_v38  ;;  %v3332_v2 = vpack.c.bf16 %v700_v55, %v698_v39 }
 0x194   : > { %v599_v3 = vmax.f32 %v537_v48, 0.0  ;;  %1208 = vrot.lane.b32.xlu0 %v3256_v52, %s2956_s11  ;;  %v701_v4 = vsel %vm3196_vm5, %v598_v45, 0.0  ;;  %v663_v5 = vsel %vm3192_vm4, %v598_v45, 0.0 }
 0x195   : > { %v600_v7 = vmax.f32 %v539_v56, 0.0  ;;  %v542_v8 = vpop.f32.mrb[18].mxu0  ;;  %2422 = vmatprep.subr.bf16.mxu1 %v3328_v57  ;;  %1065 = vrot.lane.b32.xlu1 %v3252_v50, %s2953_s8  ;;  %v3343_v9 = vpack.c.bf16 %v701_v4, %v699_v41  ;;  %v3345_v10 = vpack.c.bf16 %v663_v5, %v661_v42 }
 0x196   : > { %v543_v11 = vadd.f32 %v542_v8, %v334_v6  ;;  %v544_v12 = vpop.f32.mrb[19].mxu0  ;;  %2423 = vmatpush1.bf16.msra.mxu1 %v3322_v53  ;;  %v664_v13 = vsel %vm3184_vm2, %v599_v3, 0.0  ;;  %v702_v14 = vsel %vm3188_vm3, %v599_v3, 0.0 }
 0x197   : > { %v545_v16 = vadd.f32 %v544_v12, %v334_v6  ;;  %v703_v17 = vsel %vm3196_vm5, %v600_v7, 0.0  ;;  %v665_v19 = vsel %vm3192_vm4, %v600_v7, 0.0  ;;  %v349_v12 = vpop.permute.xlu0 %348 }
 0x198   : > { %v601_v26 = vmax.f32 %v543_v11, 0.0  ;;  %920 = vrot.lane.b32.xlu0 %v3267_v61, %s2951_s6 }
 0x199   : > { %v602_v28 = vmax.f32 %v545_v16, 0.0  ;;  %v548_v29 = vpop.f32.mrb[20].mxu0  ;;  %1528 = vrot.lane.b32.xlu1 %v3256_v52, %s2952_s7 }
 0x19a   : > { %v549_v30 = vadd.f32 %v548_v29, %v339_v27  ;;  %v550_v33 = vpop.f32.mrb[21].mxu0  ;;  %v3360_v36 = vpack.c.bf16 %v601_v26, %v599_v3  ;;  %v666_v37 = vsel %vm3184_vm2, %v601_v26, 0.0  ;;  %v704_v38 = vsel %vm3188_vm3, %v601_v26, 0.0 }
 0x19b   : > { %v551_v39 = vadd.f32 %v550_v33, %v339_v27  ;;  %v3366_v40 = vpack.c.bf16 %v602_v28, %v600_v7  ;;  %v3368_v41 = vpack.c.bf16 %v666_v37, %v664_v13  ;;  %v3370_v42 = vpack.c.bf16 %v704_v38, %v702_v14 }
 0x19c   : > { %v603_v43 = vmax.f32 %v549_v30, 0.0  ;;  %1530 = vrot.lane.b32.xlu0 %v3269_v62, %s2952_s7  ;;  %v705_v44 = vsel %vm3196_vm5, %v602_v28, 0.0  ;;  %v667_v45 = vsel %vm3192_vm4, %v602_v28, 0.0 }
 0x19d   : > { %4306 = vst [vmem:[#allocation6_spill] sm:$0xff] %v3370_v42  ;;  %v604_v48 = vmax.f32 %v551_v39, 0.0  ;;  %v554_v49 = vpop.f32.mrb[22].mxu0  ;;  %2424 = vmatprep.subr.bf16.mxu1 %v3366_v40  ;;  %1673 = vrot.lane.b32.xlu1 %v3254_v51, %s2955_s10  ;;  %v3381_v54 = vpack.c.bf16 %v705_v44, %v703_v17  ;;  %v3383_v55 = vpack.c.bf16 %v667_v45, %v665_v19 }
 0x19e   : > { %v555_v56 = vadd.f32 %v554_v49, %v344_v47  ;;  %v556_v3 = vpop.f32.mrb[23].mxu0  ;;  %2425 = vmatpush1.bf16.msra.mxu1 %v3360_v36  ;;  %v668_v4 = vsel %vm3184_vm2, %v603_v43, 0.0  ;;  %v706_v5 = vsel %vm3188_vm3, %v603_v43, 0.0 }
 0x19f   : > { %4307 = vst [vmem:[#allocation7_spill] sm:$0xff] %v3381_v54  ;;  %v557_v6 = vadd.f32 %v556_v3, %v344_v47  ;;  %v669_v7 = vsel %vm3192_vm4, %v604_v48, 0.0  ;;  %v707_v8 = vsel %vm3196_vm5, %v604_v48, 0.0 }
 0x1a0   : > { %v605_v11 = vmax.f32 %v555_v56, 0.0  ;;  %1675 = vrot.lane.b32.xlu0 %v3267_v61, %s2955_s10 }
 0x1a1   : > { %v606_v13 = vmax.f32 %v557_v6, 0.0  ;;  %v560_v14 = vpop.f32.mrb[24].mxu0  ;;  %1210 = vrot.lane.b32.xlu1 %v3269_v62, %s2956_s11 }
 0x1a2   : > { %v561_v16 = vadd.f32 %v560_v14, %v349_v12  ;;  %v562_v17 = vpop.f32.mrb[25].mxu0  ;;  %v3398_v19 = vpack.c.bf16 %v605_v11, %v603_v43  ;;  %v670_v26 = vsel %vm3184_vm2, %v605_v11, 0.0  ;;  %v708_v27 = vsel %vm3188_vm3, %v605_v11, 0.0  ;;  %v354_v43 = vpop.permute.xlu1 %353 }
 0x1a3   : > { %v563_v28 = vadd.f32 %v562_v17, %v349_v12  ;;  %v3404_v29 = vpack.c.bf16 %v606_v13, %v604_v48  ;;  %v3406_v30 = vpack.c.bf16 %v670_v26, %v668_v4  ;;  %v3408_v33 = vpack.c.bf16 %v708_v27, %v706_v5 }
 0x1a4   : > { %v607_v37 = vmax.f32 %v561_v16, 0.0  ;;  %1069 = vrot.lane.b32.xlu0 %v3284_v15, %s2953_s8  ;;  %v671_v38 = vsel %vm3192_vm4, %v606_v13, 0.0  ;;  %v709_v39 = vsel %vm3196_vm5, %v606_v13, 0.0 }
 0x1a5   : > { %4308 = vst [vmem:[#allocation8_spill] sm:$0xff] %v3408_v33  ;;  %v608_v44 = vmax.f32 %v563_v28, 0.0  ;;  %v566_v45 = vpop.f32.mrb[26].mxu0  ;;  %2426 = vmatprep.subr.bf16.mxu1 %v3404_v29  ;;  %924 = vrot.lane.b32.xlu1 %v3292_v21, %s2951_s6  ;;  %v3419_v47 = vpack.c.bf16 %v671_v38, %v669_v7  ;;  %v3421_v48 = vpack.c.bf16 %v709_v39, %v707_v8  ;;  %v359_v8 = vpop.permute.xlu0 %358 }
 0x1a6   : > { %v672_v49 = vsel %vm3184_vm2, %v607_v37, 0.0  ;;  %v710_v56 = vsel %vm3188_vm3, %v607_v37, 0.0  ;;  %v567_v3 = vadd.f32 %v566_v45, %v354_v43  ;;  %v568_v4 = vpop.f32.mrb[27].mxu0  ;;  %2427 = vmatpush1.bf16.msra.mxu1 %v3398_v19 }
 0x1a7   : > { %4309 = vst [vmem:[#allocation9_spill] sm:$0xff] %v3421_v48  ;;  %v673_v5 = vsel %vm3192_vm4, %v608_v44, 0.0  ;;  %v711_v6 = vsel %vm3196_vm5, %v608_v44, 0.0  ;;  %v569_v7 = vadd.f32 %v568_v4, %v354_v43 }
 0x1a8   : > { %v609_v11 = vmax.f32 %v567_v3, 0.0  ;;  %1214 = vrot.lane.b32.xlu0 %v3294_v25, %s2956_s11 }
 0x1a9   : > { %v610_v12 = vmax.f32 %v569_v7, 0.0  ;;  %v572_v13 = vpop.f32.mrb[28].mxu0  ;;  %1071 = vrot.lane.b32.xlu1 %v3290_v20, %s2953_s8 }
 0x1aa   : > { %v674_v14 = vsel %vm3184_vm2, %v609_v11, 0.0  ;;  %v712_v16 = vsel %vm3188_vm3, %v609_v11, 0.0  ;;  %v573_v17 = vadd.f32 %v572_v13, %v359_v8  ;;  %v574_v26 = vpop.f32.mrb[29].mxu0  ;;  %v3440_v27 = vpack.c.bf16 %v609_v11, %v607_v37  ;;  %v364_v37 = vpop.permute.xlu1 %363 }
 0x1ab   : > { %v3442_v28 = vpack.c.bf16 %v674_v14, %v672_v49  ;;  %v3444_v38 = vpack.c.bf16 %v712_v16, %v710_v56  ;;  %v675_v39 = vsel %vm3192_vm4, %v610_v12, 0.0  ;;  %v713_v43 = vsel %vm3196_vm5, %v610_v12, 0.0 }
 0x1ac   : > { %v3450_v45 = vpack.c.bf16 %v675_v39, %v673_v5  ;;  %v3452_v3 = vpack.c.bf16 %v713_v43, %v711_v6  ;;  %v611_v4 = vmax.f32 %v573_v17, 0.0  ;;  %v575_v7 = vadd.f32 %v574_v26, %v359_v8  ;;  %926 = vrot.lane.b32.xlu0 %v3305_v34, %s2951_s6 }
 0x1ad   : > { %v578_v49 = vpop.f32.mrb[30].mxu0  ;;  %v3456_v11 = vpack.c.bf16 %v610_v12, %v608_v44  ;;  %1534 = vrot.lane.b32.xlu1 %v3294_v25, %s2952_s7 }
 0x1ae   : > { %v676_v56 = vsel %vm3184_vm2, %v611_v4, 0.0  ;;  %v714_v5 = vsel %vm3188_vm3, %v611_v4, 0.0  ;;  %v612_v6 = vmax.f32 %v575_v7, 0.0  ;;  %v579_v13 = vadd.f32 %v578_v49, %v364_v37  ;;  %v580_v14 = vpop.f32.mrb[31].mxu0  ;;  %v3480_v7 = vpop.permute.xlu0 %2760 }
 0x1af   : > { %2428 = vmatprep.subr.bf16.mxu1 %v3456_v11  ;;  %v581_v8 = vadd.f32 %v580_v14, %v364_v37 }
 0x1b0   : > { %v677_v16 = vsel %vm3192_vm4, %v612_v6, 0.0  ;;  %v715_v44 = vsel %vm3196_vm5, %v612_v6, 0.0  ;;  %v613_v12 = vmax.f32 %v579_v13, 0.0  ;;  %2429 = vmatpush1.bf16.msra.mxu1 %v3440_v27  ;;  %1536 = vrot.lane.b32.xlu0 %v3307_v35, %s2952_s7 }
 0x1b1   : > { %v614_v17 = vmax.f32 %v581_v8, 0.0  ;;  %1679 = vrot.lane.b32.xlu1 %v3292_v21, %s2955_s10  ;;  %v3490_v8 = vpop.permute.xlu1 %2765 }
 0x1b2   : > { %v678_v26 = vsel %vm3184_vm2, %v613_v12, 0.0  ;;  %v716_v39 = vsel %vm3188_vm3, %v613_v12, 0.0  ;;  %v3478_v43 = vpack.c.bf16 %v613_v12, %v611_v4  ;;  %v3506_v63 = vpop.permute.xlu0 %2770 }
 0x1b3   : > { %v3482_v37 = vpack.c.bf16 %v678_v26, %v676_v56  ;;  %v3484_v49 = vpack.c.bf16 %v716_v39, %v714_v5  ;;  %v679_v13 = vsel %vm3192_vm4, %v614_v17, 0.0  ;;  %v717_v14 = vsel %vm3196_vm5, %v614_v17, 0.0 }
 0x1b4   : > { %v3492_v59 = vpack.c.bf16 %v679_v13, %v677_v16  ;;  %v3494_v60 = vpack.c.bf16 %v717_v14, %v715_v44  ;;  %1681 = vrot.lane.b32.xlu0 %v3305_v34, %s2955_s10  ;;  %v3498_v4 = vpack.c.bf16 %v614_v17, %v612_v6 }
 0x1b5   : > { %1216 = vrot.lane.b32.xlu1 %v3307_v35, %s2956_s11  ;;  %v3510_v0 = vpop.permute.xlu1 %2775 }
 0x1b6   : > { %2430 = vmatprep.subr.bf16.mxu1 %v3498_v4  ;;  %v3516_v56 = vpop.permute.xlu0 %2785 }
 0x1b7   : > { %2431 = vmatpush1.bf16.msra.mxu1 %v3478_v43  ;;  %4310 = vst [vmem:[#allocation10_spill] sm:$0xff] %v3516_v56  ;;  %v2762_v56 = vunpack.i.l.bf16 %v3480_v7 }
 0x1b8   : > { %1075 = vrot.lane.b32.xlu0 %v3322_v53, %s2953_s8 }
 0x1b9   : > { %1077 = vrot.lane.b32.xlu1 %v3328_v57, %s2953_s8  ;;  %v3518_v5 = vpop.permute.xlu1 %2780 }
 0x1ba   : > { %v3526_v6 = vpop.permute.xlu0 %2795 }
 0x1bb   : > { %4311 = vst [vmem:[#allocation11_spill] sm:$0xff] %v3526_v6  ;;  %v2782_v6 = vunpack.i.l.bf16 %v3518_v5 }
 0x1bc   : > { %930 = vrot.lane.b32.xlu0 %v3330_v58, %s2951_s6 }
 0x1bd   : > { %1540 = vrot.lane.b32.xlu1 %v3332_v2, %s2952_s7  ;;  %v3530_v16 = vpop.permute.xlu1 %2790 }
 0x1be   : > { %v3536_v44 = vpop.permute.xlu0 %2805 }
 0x1bf   : > { %4312 = vst [vmem:[#allocation12_spill] sm:$0xff] %v3536_v44 }
 0x1c0   : > { %1220 = vrot.lane.b32.xlu0 %v3332_v2, %s2956_s11 }
 0x1c1   : > { %1685 = vrot.lane.b32.xlu1 %v3330_v58, %s2955_s10  ;;  %v3538_v12 = vpop.permute.xlu1 %2800 }
 0x1c2   : > { %v3546_v17 = vpop.permute.xlu0 %2815 }
 0x1c3   : > { %4313 = vst [vmem:[#allocation13_spill] sm:$0xff] %v3546_v17 }
 0x1c4   : > { %1542 = vrot.lane.b32.xlu0 %v3343_v9, %s2952_s7 }
 0x1c5   : > { %932 = vrot.lane.b32.xlu1 %v3345_v10, %s2951_s6  ;;  %v3550_v26 = vpop.permute.xlu1 %2810 }
 0x1c6   : > { %v3556_v39 = vpop.permute.xlu0 %2825 }
 0x1c7   : > { %4314 = vst [vmem:[#allocation14_spill] sm:$0xff] %v3556_v39 }
 0x1c8   : > { %1687 = vrot.lane.b32.xlu0 %v3345_v10, %s2955_s10 }
 0x1c9   : > { %1222 = vrot.lane.b32.xlu1 %v3343_v9, %s2956_s11  ;;  %v3558_v13 = vpop.permute.xlu1 %2820 }
 0x1ca   : > { %4315 = vst [vmem:[#allocation15_spill] sm:$0xff] %v3558_v13  ;;  %v3566_v14 = vpop.permute.xlu0 %2835 }
 0x1cb   : > { %4316 = vst [vmem:[#allocation16_spill] sm:$0xff] %v3566_v14 }
 0x1cc   : > { %1081 = vrot.lane.b32.xlu0 %v3360_v36, %s2953_s8 }
 0x1cd   : > { %1083 = vrot.lane.b32.xlu1 %v3366_v40, %s2953_s8  ;;  %v3570_v1 = vpop.permute.xlu1 %2830 }
 0x1ce   : > { %4317 = vst [vmem:[#allocation17_spill] sm:$0xff] %v3570_v1  ;;  %v3576_v39 = vpop.permute.xlu0 %2845 }
 0x1cf   : > { %4318 = vst [vmem:[#allocation18_spill] sm:$0xff] %v3576_v39 }
 0x1d0   : > { %936 = vrot.lane.b32.xlu0 %v3368_v41, %s2951_s6 }
 0x1d1   : > { %1546 = vrot.lane.b32.xlu1 %v3370_v42, %s2952_s7  ;;  %v3578_v13 = vpop.permute.xlu1 %2840 }
 0x1d2   : > { %4319 = vst [vmem:[#allocation19_spill] sm:$0xff] %v3578_v13  ;;  %v3586_v14 = vpop.permute.xlu0 %2855 }
 0x1d3   : > { %4320 = vst [vmem:[#allocation20_spill] sm:$0xff] %v3586_v14 }
 0x1d4   : > { %1226 = vrot.lane.b32.xlu0 %v3370_v42, %s2956_s11 }
 0x1d5   : > { %1691 = vrot.lane.b32.xlu1 %v3368_v41, %s2955_s10  ;;  %v3590_v1 = vpop.permute.xlu1 %2850 }
 0x1d6   : > { %4321 = vst [vmem:[#allocation21_spill] sm:$0xff] %v3590_v1 }
 0x1d8   : > { %1548 = vrot.lane.b32.xlu0 %v3381_v54, %s2952_s7 }
 0x1d9   : > { %938 = vrot.lane.b32.xlu1 %v3383_v55, %s2951_s6 }
 0x1dc   : > { %1693 = vrot.lane.b32.xlu0 %v3383_v55, %s2955_s10 }
 0x1dd   : > { %1228 = vrot.lane.b32.xlu1 %v3381_v54, %s2956_s11 }
 0x1e0   : > { %1087 = vrot.lane.b32.xlu0 %v3398_v19, %s2953_s8 }
 0x1e1   : > { %942 = vrot.lane.b32.xlu1 %v3406_v30, %s2951_s6 }
 0x1e4   : > { %1232 = vrot.lane.b32.xlu0 %v3408_v33, %s2956_s11 }
 0x1e5   : > { %1089 = vrot.lane.b32.xlu1 %v3404_v29, %s2953_s8 }
 0x1e8   : > { %944 = vrot.lane.b32.xlu0 %v3419_v47, %s2951_s6 }
 0x1e9   : > { %1552 = vrot.lane.b32.xlu1 %v3408_v33, %s2952_s7 }
 0x1ec   : > { %1554 = vrot.lane.b32.xlu0 %v3421_v48, %s2952_s7 }
 0x1ed   : > { %1697 = vrot.lane.b32.xlu1 %v3406_v30, %s2955_s10 }
 0x1ee   : > { %v3596_v39 = vpop.permute.xlu0 %1057 }
 0x1ef   : > { %4322 = vst [vmem:[#allocation22_spill] sm:$0xff] %v3596_v39  ;;  %v3598_v13 = vpop.permute.xlu1 %1059 }
 0x1f0   : > { %4323 = vst [vmem:[#allocation23_spill] sm:$0xff] %v3598_v13  ;;  %1699 = vrot.lane.b32.xlu0 %v3419_v47, %s2955_s10 }
 0x1f1   : > { %1234 = vrot.lane.b32.xlu1 %v3421_v48, %s2956_s11 }
 0x1f2   : > { %v913_v14 = vpop.permute.xlu0 %912 }
 0x1f3   : > { %v1523_v17 = vpop.permute.xlu1 %1522  ;;  %v959_v48 = vsel %vm958_vm7, %v2762_v56, %v913_v14  ;;  %v2763_v56 = vunpack.i.h.bf16 %v3480_v7 }
 0x1f4   : > { %1093 = vrot.lane.b32.xlu0 %v3440_v27, %s2953_s8 }
 0x1f5   : > { %948 = vrot.lane.b32.xlu1 %v3442_v28, %s2951_s6 }
 0x1f6   : > { %v3608_v1 = vpop.permute.xlu0 %1202 }
 0x1f7   : > { %4324 = vst [vmem:[#allocation24_spill] sm:$0xff] %v3608_v1  ;;  %v3610_v44 = vpop.permute.xlu1 %1667 }
 0x1f8   : > { %4325 = vst [vmem:[#allocation25_spill] sm:$0xff] %v3610_v44  ;;  %1238 = vrot.lane.b32.xlu0 %v3444_v38, %s2956_s11 }
 0x1f9   : > { %1095 = vrot.lane.b32.xlu1 %v3456_v11, %s2953_s8 }
 0x1fa   : > { %v1525_v33 = vpop.permute.xlu0 %1524 }
 0x1fb   : > { %v915_v39 = vpop.permute.xlu1 %914  ;;  %v1572_v13 = vsel %vm1570_vm6, %v1525_v33, %v2782_v6  ;;  %v1571_v1 = vsel %vm1570_vm6, %v1523_v17, %v1525_v33 }
 0x1fc   : > { %950 = vrot.lane.b32.xlu0 %v3450_v45, %s2951_s6  ;;  %2432 = vmatprep.subr.bf16.mxu1 %v1572_v13  ;;  %v960_v44 = vsel %vm958_vm7, %v913_v14, %v915_v39  ;;  %v2783_v14 = vunpack.i.h.bf16 %v3518_v5 }
 0x1fd   : > { %1558 = vrot.lane.b32.xlu1 %v3444_v38, %s2952_s7  ;;  %2310 = vmatprep.subr.bf16.mxu0 %v960_v44 }
 0x1fe   : > { %2433 = vmatpush1.bf16.msra.mxu1 %v1571_v1  ;;  %2311 = vmatpush1.bf16.msra.mxu0 %v959_v48  ;;  %v3626_v42 = vpop.permute.xlu0 %1669 }
 0x1ff   : > { %4326 = vst [vmem:[#allocation26_spill] sm:$0xff] %v3626_v42  ;;  %v3628_v54 = vpop.permute.xlu1 %1204 }
 0x200   : > { %4327 = vst [vmem:[#allocation27_spill] sm:$0xff] %v3628_v54  ;;  %1560 = vrot.lane.b32.xlu0 %v3452_v3, %s2952_s7 }
 0x201   : > { %1703 = vrot.lane.b32.xlu1 %v3442_v28, %s2955_s10 }
 0x202   : > { %v3634_v33 = vpop.permute.xlu0 %1063 }
 0x203   : > { %v919_v6 = vpop.permute.xlu1 %918 }
 0x204   : > { %1705 = vrot.lane.b32.xlu0 %v3450_v45, %s2955_s10  ;;  %v961_v13 = vsel %vm958_vm7, %v2763_v56, %v919_v6 }
 0x205   : > { %1240 = vrot.lane.b32.xlu1 %v3452_v3, %s2956_s11 }
 0x206   : > { %v3640_v1 = vpop.permute.xlu0 %1208 }
 0x207   : > { %4328 = vst [vmem:[#allocation28_spill] sm:$0xff] %v3640_v1  ;;  %v3642_v48 = vpop.permute.xlu1 %1065 }
 0x208   : > { %1099 = vrot.lane.b32.xlu0 %v3478_v43, %s2953_s8 }
 0x209   : > { %1101 = vrot.lane.b32.xlu1 %v3498_v4, %s2953_s8  ;;  %s2957_s8 = smov 1  }
 0x20a   : > { %v921_v44 = vpop.permute.xlu0 %920 }
 0x20b   : > { %v1529_v17 = vpop.permute.xlu1 %1528  ;;  %v962_v39 = vsel %vm958_vm7, %v919_v6, %v921_v44 }
 0x20c   : > { %954 = vrot.lane.b32.xlu0 %v3482_v37, %s2951_s6  ;;  %2312 = vmatprep.subr.bf16.mxu0 %v962_v39 }
 0x20d   : > { %1564 = vrot.lane.b32.xlu1 %v3484_v49, %s2952_s7  ;;  %2313 = vmatpush1.bf16.msra.mxu0 %v961_v13 }
 0x20e   : > { %v1531_v1 = vpop.permute.xlu0 %1530 }
 0x20f   : > { %v3656_v54 = vpop.permute.xlu1 %1673  ;;  %v1574_v7 = vsel %vm1570_vm6, %v1531_v1, %v2783_v14  ;;  %v1573_v42 = vsel %vm1570_vm6, %v1529_v17, %v1531_v1  ;;  %v4332_v17 = vmov 0  }
 0x210   : > { %4329 = vst [vmem:[#allocation29_spill] sm:$0xff] %v3656_v54  ;;  %1244 = vrot.lane.b32.xlu0 %v3484_v49, %s2956_s11  ;;  %2434 = vmatprep.subr.bf16.mxu1 %v1574_v7 }
 0x211   : > { %956 = vrot.lane.b32.xlu1 %v3492_v59, %s2951_s6  ;;  %2435 = vmatpush1.bf16.msra.mxu1 %v1573_v42 }
 0x212   : > { %v3664_v5 = vpop.permute.xlu0 %1675 }
 0x213   : > { %v3666_v6 = vpop.permute.xlu1 %1210 }
 0x214   : > { %4330 = vst [vmem:[#allocation30_spill] sm:$0xff] %v3666_v6  ;;  %1347 = vrot.lane.b32.xlu0 %v3216_v23, %s2957_s8  ;;  %v2767_v23 = vunpack.i.l.bf16 %v3490_v8 }
 0x215   : > { %1709 = vrot.lane.b32.xlu1 %v3482_v37, %s2955_s10 }
 0x216   : > { %v3672_v1 = vpop.permute.xlu0 %1069 }
 0x217   : > { %v925_v56 = vpop.permute.xlu1 %924 }
 0x218   : > { %1814 = vrot.lane.b32.xlu0 %v3214_v22, %s2958_s9  ;;  %v963_v22 = vsel %vm958_vm7, %v2767_v23, %v925_v56 }
 0x219   : > { %1349 = vrot.lane.b32.xlu1 %v3231_v32, %s2957_s8  ;;  %v2792_v32 = vunpack.i.l.bf16 %v3530_v16 }
 0x21a   : > { %v3678_v42 = vpop.permute.xlu0 %1214 }
 0x21b   : > { %4331 = vst [vmem:[#allocation31_spill] sm:$0xff] %v3678_v42  ;;  %v3680_v44 = vpop.permute.xlu1 %1071 }
 0x21c   : > { %2865 = vrot.lane.b32.xlu0 %v4332_v17, %s2957_s8 }
 0x21d   : > { %2860 = vrot.lane.b32.xlu1 %v4332_v17, %s2958_s9 }
 0x21e   : > { %v927_v39 = vpop.permute.xlu0 %926 }
 0x21f   : > { %v1535_v13 = vpop.permute.xlu1 %1534  ;;  %v964_v14 = vsel %vm958_vm7, %v925_v56, %v927_v39  ;;  %v2768_v39 = vunpack.i.h.bf16 %v3490_v8 }
 0x220   : > { %1353 = vrot.lane.b32.xlu0 %v3254_v51, %s2957_s8  ;;  %2314 = vmatprep.subr.bf16.mxu0 %v964_v14 }
 0x221   : > { %1812 = vrot.lane.b32.xlu1 %v3208_v18, %s2958_s9  ;;  %2315 = vmatpush1.bf16.msra.mxu0 %v963_v22  ;;  %v2916_v18 = vld [vmem:[%s4273_s4 + $0x14] ss:$36 sps:$4 sm:$0xff]  }
 0x222   : > { %v1537_v7 = vpop.permute.xlu0 %1536  ;;  %2448 = vmatprep.mubr.bf16.mxu1 %v2916_v18 }
 0x223   : > { %v3694_v42 = vpop.permute.xlu1 %1679  ;;  %v1576_v54 = vsel %vm1570_vm6, %v1537_v7, %v2792_v32  ;;  %v1575_v6 = vsel %vm1570_vm6, %v1535_v13, %v1537_v7 }
 0x224   : > { %1820 = vrot.lane.b32.xlu0 %v3252_v50, %s2958_s9  ;;  %2436 = vmatprep.subr.bf16.mxu1 %v1576_v54  ;;  %v2919_v50 = vld [vmem:[%s4273_s4 + $0x4] ss:$36 sps:$4 sm:$0xff]  }
 0x225   : > { %1355 = vrot.lane.b32.xlu1 %v3267_v61, %s2957_s8  ;;  %2437 = vmatpush1.bf16.msra.mxu1 %v1575_v6 }
 0x226   : > { %v3702_v51 = vpop.permute.xlu0 %1681  ;;  %2342 = vmatprep.mubr.bf16.mxu0 %v2919_v50  ;;  %v2802_v50 = vunpack.i.l.bf16 %v3538_v12 }
 0x227   : > { %v3704_v56 = vpop.permute.xlu1 %1216 }
 0x228   : > { %1359 = vrot.lane.b32.xlu0 %v3292_v21, %s2957_s8 }
 0x229   : > { %1818 = vrot.lane.b32.xlu1 %v3246_v46, %s2958_s9 }
 0x22a   : > { %v3716_v61 = vpop.permute.xlu0 %1075 }
 0x22b   : > { %v3718_v54 = vpop.permute.xlu1 %1077 }
 0x22c   : > { %1826 = vrot.lane.b32.xlu0 %v3290_v20, %s2958_s9  ;;  %v2793_v20 = vunpack.i.h.bf16 %v3530_v16 }
 0x22d   : > { %1361 = vrot.lane.b32.xlu1 %v3305_v34, %s2957_s8 }
 0x22e   : > { %v931_v21 = vpop.permute.xlu0 %930 }
 0x22f   : > { %v1541_v6 = vpop.permute.xlu1 %1540 }
 0x230   : > { %1566 = vrot.lane.b32.xlu0 %v3494_v60, %s2952_s7  ;;  %s2959_s7 = smov 111  }
 0x231   : > { %2870 = vrot.lane.b32.xlu1 %v4332_v17, %s2958_s9 }
 0x232   : > { %v3728_v46 = vpop.permute.xlu0 %1220 }
 0x233   : > { %v3730_v23 = vpop.permute.xlu1 %1685 }
 0x234   : > { %2875 = vrot.lane.b32.xlu0 %v4332_v17, %s2957_s8 }
 0x235   : > { %1824 = vrot.lane.b32.xlu1 %v3284_v15, %s2958_s9  ;;  %v965_v15 = vsel %vm958_vm7, %v2768_v39, %v931_v21 }
 0x236   : > { %v1543_v34 = vpop.permute.xlu0 %1542 }
 0x237   : > { %v933_v13 = vpop.permute.xlu1 %932  ;;  %v1578_v14 = vsel %vm1570_vm6, %v1543_v34, %v2793_v20  ;;  %v1577_v22 = vsel %vm1570_vm6, %v1541_v6, %v1543_v34 }
 0x238   : > { %1365 = vrot.lane.b32.xlu0 %v3330_v58, %s2957_s8  ;;  %2438 = vmatprep.subr.bf16.mxu1 %v1578_v14  ;;  %v966_v32 = vsel %vm958_vm7, %v931_v21, %v933_v13 }
 0x239   : > { %1367 = vrot.lane.b32.xlu1 %v3345_v10, %s2957_s8  ;;  %2316 = vmatprep.subr.bf16.mxu0 %v966_v32 }
 0x23a   : > { %2439 = vmatpush1.bf16.msra.mxu1 %v1577_v22  ;;  %2317 = vmatpush1.bf16.msra.mxu0 %v965_v15  ;;  %v3746_v8 = vpop.permute.xlu0 %1687 }
 0x23b   : > { %v3748_v16 = vpop.permute.xlu1 %1222 }
 0x23c   : > { %1832 = vrot.lane.b32.xlu0 %v3328_v57, %s2958_s9 }
 0x23d   : > { %1830 = vrot.lane.b32.xlu1 %v3322_v53, %s2958_s9 }
 0x23e   : > { %v3754_v58 = vpop.permute.xlu0 %1081 }
 0x23f   : > { %v3756_v7 = vpop.permute.xlu1 %1083 }
 0x240   : > { %1371 = vrot.lane.b32.xlu0 %v3368_v41, %s2957_s8 }
 0x241   : > { %1373 = vrot.lane.b32.xlu1 %v3383_v55, %s2957_s8  ;;  %v2772_v55 = vunpack.i.l.bf16 %v3506_v63 }
 0x242   : > { %v937_v10 = vpop.permute.xlu0 %936 }
 0x243   : > { %v1547_v18 = vpop.permute.xlu1 %1546 }
 0x244   : > { %1838 = vrot.lane.b32.xlu0 %v3366_v40, %s2958_s9 }
 0x245   : > { %2880 = vrot.lane.b32.xlu1 %v4332_v17, %s2958_s9 }
 0x246   : > { %v3766_v57 = vpop.permute.xlu0 %1226 }
 0x247   : > { %v1692_v53 = vpop.permute.xlu1 %1691 }
 0x248   : > { %2885 = vrot.lane.b32.xlu0 %v4332_v17, %s2957_s8 }
 0x249   : > { %1836 = vrot.lane.b32.xlu1 %v3360_v36, %s2958_s9  ;;  %v967_v36 = vsel %vm958_vm7, %v2772_v55, %v937_v10 }
 0x24a   : > { %v1549_v41 = vpop.permute.xlu0 %1548 }
 0x24b   : > { %v939_v21 = vpop.permute.xlu1 %938  ;;  %v1580_v40 = vsel %vm1570_vm6, %v1549_v41, %v2802_v50  ;;  %v1579_v6 = vsel %vm1570_vm6, %v1547_v18, %v1549_v41 }
 0x24c   : > { %1377 = vrot.lane.b32.xlu0 %v3406_v30, %s2957_s8  ;;  %2440 = vmatprep.subr.bf16.mxu1 %v1580_v40  ;;  %v968_v20 = vsel %vm958_vm7, %v937_v10, %v939_v21  ;;  %v2773_v10 = vunpack.i.h.bf16 %v3506_v63 }
 0x24d   : > { %1379 = vrot.lane.b32.xlu1 %v3419_v47, %s2957_s8  ;;  %2318 = vmatprep.subr.bf16.mxu0 %v968_v20 }
 0x24e   : > { %2441 = vmatpush1.bf16.msra.mxu1 %v1579_v6  ;;  %2319 = vmatpush1.bf16.msra.mxu0 %v967_v36  ;;  %v3782_v34 = vpop.permute.xlu0 %1693 }
 0x24f   : > { %v3786_v39 = vsel %vm1715_vm8, %v1692_v53, %v3782_v34  ;;  %v1229_v30 = vpop.permute.xlu1 %1228 }
 0x250   : > { %1711 = vrot.lane.b32.xlu0 %v3492_v59, %s2955_s10  ;;  %v3792_v47 = vsel %vm1248_vm9, %v3766_v57, %v1229_v30 }
 0x251   : > { %1246 = vrot.lane.b32.xlu1 %v3494_v60, %s2956_s11 }
 0x252   : > { %v3796_v13 = vpop.permute.xlu0 %1087 }
 0x253   : > { %v943_v14 = vpop.permute.xlu1 %942 }
 0x254   : > { %1844 = vrot.lane.b32.xlu0 %v3404_v29, %s2958_s9  ;;  %v969_v53 = vsel %vm958_vm7, %v2773_v10, %v943_v14 }
 0x255   : > { %1842 = vrot.lane.b32.xlu1 %v3398_v19, %s2958_s9 }
 0x256   : > { %v3802_v22 = vpop.permute.xlu0 %1232 }
 0x257   : > { %v1090_v32 = vpop.permute.xlu1 %1089 }
 0x258   : > { %1383 = vrot.lane.b32.xlu0 %v3442_v28, %s2957_s8  ;;  %v3808_v15 = vsel %vm1103_vm10, %v3796_v13, %v1090_v32  ;;  %v2803_v28 = vunpack.i.h.bf16 %v3538_v12 }
 0x259   : > { %1385 = vrot.lane.b32.xlu1 %v3450_v45, %s2957_s8 }
 0x25a   : > { %v945_v29 = vpop.permute.xlu0 %944 }
 0x25b   : > { %v1553_v18 = vpop.permute.xlu1 %1552  ;;  %v970_v19 = vsel %vm958_vm7, %v943_v14, %v945_v29  ;;  %v2812_v14 = vunpack.i.l.bf16 %v3550_v26 }
 0x25c   : > { %1850 = vrot.lane.b32.xlu0 %v3456_v11, %s2958_s9  ;;  %2320 = vmatprep.subr.bf16.mxu0 %v970_v19 }
 0x25d   : > { %2890 = vrot.lane.b32.xlu1 %v4332_v17, %s2958_s9  ;;  %2321 = vmatpush1.bf16.msra.mxu0 %v969_v53 }
 0x25e   : > { %v1555_v50 = vpop.permute.xlu0 %1554 }
 0x25f   : > { %v1698_v45 = vpop.permute.xlu1 %1697  ;;  %v1582_v63 = vsel %vm1570_vm6, %v1555_v50, %v2803_v28  ;;  %v1581_v41 = vsel %vm1570_vm6, %v1553_v18, %v1555_v50  ;;  %v4333_v28 = vld [vmem:[#allocation7_spill] sm:$0xff]  ;;  %v2778_v50 = vunpack.i.h.bf16 %v3510_v0 }
 0x260   : > { %2895 = vrot.lane.b32.xlu0 %v4332_v17, %s2957_s8  ;;  %2442 = vmatprep.subr.bf16.mxu1 %v1582_v63  ;;  %v4334_v63 = vld [vmem:[#allocation6_spill] sm:$0xff] }
 0x261   : > { %1848 = vrot.lane.b32.xlu1 %v3440_v27, %s2958_s9  ;;  %2443 = vmatpush1.bf16.msra.mxu1 %v1581_v41  ;;  %v4335_v41 = vld [vmem:[#allocation9_spill] sm:$0xff] }
 0x262   : > { %v3826_v11 = vpop.permute.xlu0 %1699 }
 0x263   : > { %v3830_v12 = vsel %vm1715_vm8, %v1698_v45, %v3826_v11  ;;  %v1235_v55 = vpop.permute.xlu1 %1234 }
 0x264   : > { %1389 = vrot.lane.b32.xlu0 %v3482_v37, %s2957_s8  ;;  %v3836_v21 = vsel %vm1248_vm9, %v3802_v22, %v1235_v55 }
 0x265   : > { %1854 = vrot.lane.b32.xlu1 %v3478_v43, %s2958_s9  ;;  %v2777_v43 = vunpack.i.l.bf16 %v3510_v0  ;;  %v4338_v0 = vld [vmem:[#allocation10_spill] sm:$0xff] }
 0x266   : > { %v3840_v40 = vpop.permute.xlu0 %1093 }
 0x267   : > { %v949_v27 = vpop.permute.xlu1 %948 }
 0x268   : > { %1856 = vrot.lane.b32.xlu0 %v3498_v4, %s2958_s9  ;;  %v971_v30 = vsel %vm958_vm7, %v2777_v43, %v949_v27  ;;  %v4337_v43 = vld [vmem:[#allocation22_spill] sm:$0xff] }
 0x269   : > { %2900 = vrot.lane.b32.xlu1 %v4332_v17, %s2959_s7 }
 0x26a   : > { %v3846_v6 = vpop.permute.xlu0 %1238 }
 0x26b   : > { %v3848_v37 = vpop.permute.xlu1 %1095 }
 0x26c   : > { %1959 = vrot.lane.b32.xlu0 %v3229_v31, %s2959_s7 }
 0x26d   : > { %1965 = vrot.lane.b32.xlu1 %v3269_v62, %s2959_s7 }
 0x26e   : > { %v951_v20 = vpop.permute.xlu0 %950 }
 0x26f   : > { %v1559_v36 = vpop.permute.xlu1 %1558  ;;  %v972_v4 = vsel %vm958_vm7, %v949_v27, %v951_v20  ;;  %v4336_v27 = vld [vmem:[#allocation23_spill] sm:$0xff] }
 0x270   : > { %1957 = vrot.lane.b32.xlu0 %v3218_v24, %s2959_s7  ;;  %2322 = vmatprep.subr.bf16.mxu0 %v972_v4  ;;  %v1105_v20 = vsel %vm1103_vm10, %v4337_v43, %v4336_v27 }
 0x271   : > { %1391 = vrot.lane.b32.xlu1 %v3492_v59, %s2957_s8  ;;  %2323 = vmatpush1.bf16.msra.mxu0 %v971_v30  ;;  %v4339_v30 = vld [vmem:[#allocation8_spill] sm:$0xff] }
 0x272   : > { %v1561_v31 = vpop.permute.xlu0 %1560 }
 0x273   : > { %v1704_v62 = vpop.permute.xlu1 %1703  ;;  %v1584_v32 = vsel %vm1570_vm6, %v1561_v31, %v2812_v14  ;;  %v1583_v10 = vsel %vm1570_vm6, %v1559_v36, %v1561_v31  ;;  %v2787_v36 = vunpack.i.l.bf16 %v4338_v0 }
 0x274   : > { %1963 = vrot.lane.b32.xlu0 %v3256_v52, %s2959_s7  ;;  %2444 = vmatprep.subr.bf16.mxu1 %v1584_v32  ;;  %v2788_v32 = vunpack.i.h.bf16 %v4338_v0  ;;  %v1117_v0 = vsel %vm1103_vm10, %v3840_v40, %v3848_v37 }
 0x275   : > { %1971 = vrot.lane.b32.xlu1 %v3307_v35, %s2959_s7  ;;  %2445 = vmatpush1.bf16.msra.mxu1 %v1583_v10  ;;  %v1104_v14 = vsel %vm1103_vm10, %v2787_v36, %v4337_v43 }
 0x276   : > { %v3868_v24 = vpop.permute.xlu0 %1705 }
 0x277   : > { %v3872_v59 = vsel %vm1715_vm8, %v1704_v62, %v3868_v24  ;;  %v1241_v29 = vpop.permute.xlu1 %1240  ;;  %v1107_v62 = vsel %vm1103_vm10, %v3634_v33, %v3642_v48  ;;  %v1109_v48 = vsel %vm1103_vm10, %v3672_v1, %v3680_v44  ;;  %v1111_v44 = vsel %vm1103_vm10, %v3716_v61, %v3718_v54 }
 0x278   : > { %2905 = vrot.lane.b32.xlu0 %v4332_v17, %s2959_s7  ;;  %v3878_v18 = vsel %vm1248_vm9, %v3846_v6, %v1241_v29 }
 0x279   : > { %1969 = vrot.lane.b32.xlu1 %v3294_v25, %s2959_s7 }
 0x27a   : > { %v3882_v52 = vpop.permute.xlu0 %1099 }
 0x27b   : > { %v3884_v35 = vpop.permute.xlu1 %1101 }
 0x27c   : > { %1977 = vrot.lane.b32.xlu0 %v3343_v9, %s2959_s7 }
 0x27d   : > { %1975 = vrot.lane.b32.xlu1 %v3332_v2, %s2959_s7 }
 0x27e   : > { %v955_v19 = vpop.permute.xlu0 %954 }
 0x27f   : > { %v3890_v53 = vpop.permute.xlu1 %1564  ;;  %v973_v2 = vsel %vm958_vm7, %v2778_v50, %v955_v19 }
 0x280   : > { %1983 = vrot.lane.b32.xlu0 %v4333_v28, %s2959_s7 }
 0x281   : > { %2910 = vrot.lane.b32.xlu1 %v4332_v17, %s2959_s7 }
 0x282   : > { %v3896_v25 = vpop.permute.xlu0 %1244 }
 0x283   : > { %v957_v45 = vpop.permute.xlu1 %956 }
 0x284   : > { %1981 = vrot.lane.b32.xlu0 %v4334_v63, %s2959_s7  ;;  %v974_v9 = vsel %vm958_vm7, %v955_v19, %v957_v45  ;;  %v4340_v19 = vld [vmem:[#allocation11_spill] sm:$0xff] }
 0x285   : > { %1989 = vrot.lane.b32.xlu1 %v4335_v41, %s2959_s7  ;;  %2324 = vmatprep.subr.bf16.mxu0 %v974_v9  ;;  %v2797_v28 = vunpack.i.l.bf16 %v4340_v19  ;;  %v2798_v45 = vunpack.i.h.bf16 %v4340_v19  ;;  %v1113_v9 = vsel %vm1103_vm10, %v3754_v58, %v3756_v7 }
 0x286   : > { %2325 = vmatpush1.bf16.msra.mxu0 %v973_v2  ;;  %v3905_v55 = vpop.permute.xlu0 %1347  ;;  %v4341_v2 = vld [vmem:[#allocation12_spill] sm:$0xff] }
 0x287   : > { %v3911_v4 = vpop.permute.xlu1 %1709  ;;  %2326 = vmatprep.subr.bf16.mxu0 %v1105_v20  ;;  %v2807_v54 = vunpack.i.l.bf16 %v4341_v2 }
 0x288   : > { %1987 = vrot.lane.b32.xlu0 %v4339_v30, %s2959_s7 }
 0x289   : > { %1995 = vrot.lane.b32.xlu1 %v3452_v3, %s2959_s7  ;;  %v1106_v3 = vsel %vm1103_vm10, %v2788_v32, %v3634_v33  ;;  %v1112_v27 = vsel %vm1103_vm10, %v2807_v54, %v3754_v58  ;;  %v4342_v58 = vld [vmem:[#allocation13_spill] sm:$0xff] }
 0x28a   : > { %2327 = vmatpush1.bf16.msra.mxu0 %v1104_v14  ;;  %v3919_v31 = vpop.permute.xlu0 %1814  ;;  %v2817_v36 = vunpack.i.l.bf16 %v4342_v58  ;;  %v2813_v14 = vunpack.i.h.bf16 %v3550_v26  ;;  %v2818_v32 = vunpack.i.h.bf16 %v4342_v58  ;;  %v2922_v58 = vld [vmem:[%s4273_s4 + $0x4c] ss:$36 sps:$4 sm:$0xff]  }
 0x28b   : > { %v3925_v10 = vpop.permute.xlu1 %1349  ;;  %2328 = vmatprep.subr.bf16.mxu0 %v1107_v62 }
 0x28c   : > { %1997 = vrot.lane.b32.xlu0 %v4332_v17, %s2959_s7 }
 0x28d   : > { %1993 = vrot.lane.b32.xlu1 %v3444_v38, %s2959_s7  ;;  %v1108_v38 = vsel %vm1103_vm10, %v2797_v28, %v3672_v1  ;;  %v4344_v28 = vld [vmem:[#allocation26_spill] sm:$0xff] }
 0x28e   : > { %2329 = vmatpush1.bf16.msra.mxu0 %v1106_v3  ;;  %v3933_v29 = vpop.permute.xlu0 %2865  ;;  %v4343_v3 = vld [vmem:[#allocation15_spill] sm:$0xff] }
 0x28f   : > { %v3939_v50 = vpop.permute.xlu1 %2860  ;;  %2330 = vmatprep.subr.bf16.mxu0 %v1109_v48  ;;  %v2822_v37 = vunpack.i.l.bf16 %v4343_v3 }
 0x290   : > { %2001 = vrot.lane.b32.xlu0 %v3494_v60, %s2959_s7  ;;  %v1110_v60 = vsel %vm1103_vm10, %v2798_v45, %v3716_v61  ;;  %v2808_v61 = vunpack.i.h.bf16 %v4341_v2  ;;  %v4347_v2 = vld [vmem:[#allocation14_spill] sm:$0xff] }
 0x291   : > { %2003 = vrot.lane.b32.xlu1 %v4332_v17, %s2959_s7  ;;  %v2827_v54 = vunpack.i.l.bf16 %v4347_v2 }
 0x292   : > { %2331 = vmatpush1.bf16.msra.mxu0 %v1108_v38  ;;  %v3947_v33 = vpop.permute.xlu0 %1353  ;;  %v1114_v7 = vsel %vm1103_vm10, %v2808_v61, %v3796_v13  ;;  %v1119_v13 = vsel %vm1103_vm10, %v3882_v52, %v3884_v35  ;;  %v1118_v35 = vsel %vm1103_vm10, %v2818_v32, %v3882_v52  ;;  %v1717_v38 = vsel %vm1715_vm8, %v4344_v28, %v2822_v37  ;;  %v2920_v61 = vld [vmem:[%s4273_s4 + $0x5c] ss:$36 sps:$4 sm:$0xff]  }
 0x293   : > { %v3953_v63 = vpop.permute.xlu1 %1812  ;;  %2332 = vmatprep.subr.bf16.mxu0 %v1111_v44  ;;  %v2917_v44 = vld [vmem:[%s4273_s4] ss:$36 sps:$4 sm:$0xff]   ;;  %v2823_v52 = vunpack.i.h.bf16 %v4343_v3  ;;  %v2828_v3 = vunpack.i.h.bf16 %v4347_v2  ;;  %v4351_v37 = vld [vmem:[#allocation17_spill] sm:$0xff]  ;;  %v4354_v2 = vld [vmem:[#allocation16_spill] sm:$0xff] }
 0x294   : > { %1999 = vrot.lane.b32.xlu0 %v3484_v49, %s2959_s7 }
 0x296   : > { %2333 = vmatpush1.bf16.msra.mxu0 %v1110_v60  ;;  %v3959_v1 = vpop.permute.xlu0 %1820  ;;  %v4346_v60 = vld [vmem:[#allocation24_spill] sm:$0xff] }
 0x297   : > { %v3965_v41 = vpop.permute.xlu1 %1355  ;;  %2334 = vmatprep.subr.bf16.mxu0 %v1113_v9 }
 0x29a   : > { %2335 = vmatpush1.bf16.msra.mxu0 %v1112_v27  ;;  %v3969_v49 = vpop.permute.xlu0 %1359 }
 0x29b   : > { %v3972_v43 = vpop.permute.xlu1 %1818  ;;  %2336 = vmatprep.subr.bf16.mxu0 %v3808_v15  ;;  %v1116_v15 = vsel %vm1103_vm10, %v2817_v36, %v3840_v40  ;;  %v2914_v40 = vld [vmem:[%s4273_s4 + $0x10] ss:$36 sps:$4 sm:$0xff]   ;;  %v1249_v36 = vsel %vm1248_vm9, %v2827_v54, %v4346_v60  ;;  %v2837_v54 = vunpack.i.l.bf16 %v4354_v2 }
 0x29e   : > { %2337 = vmatpush1.bf16.msra.mxu0 %v1114_v7  ;;  %v3977_v20 = vpop.permute.xlu0 %1826  ;;  %v4348_v7 = vld [vmem:[#allocation25_spill] sm:$0xff] }
 0x29f   : > { %v3983_v30 = vpop.permute.xlu1 %1361  ;;  %2338 = vmatprep.subr.bf16.mxu0 %v1117_v0  ;;  %v1716_v0 = vsel %vm1715_vm8, %v4348_v7, %v4344_v28  ;;  %v2924_v28 = vld [vmem:[%s4273_s4 + $0x58] ss:$36 sps:$4 sm:$0xff]  }
 0x2a0   : > { %v2928_v7 = vld [vmem:[%s4273_s4 + $0x1c] ss:$36 sps:$4 sm:$0xff]  }
 0x2a2   : > { %2339 = vmatpush1.bf16.msra.mxu0 %v1116_v15  ;;  %v1567_v62 = vpop.permute.xlu0 %1566 }
 0x2a3   : > { %v3993_v48 = vpop.permute.xlu1 %2870  ;;  %2340 = vmatprep.subr.bf16.mxu0 %v1119_v13  ;;  %v1586_v19 = vsel %vm1570_vm6, %v1567_v62, %v2813_v14  ;;  %v1585_v26 = vsel %vm1570_vm6, %v3890_v53, %v1567_v62  ;;  %v4345_v53 = vld [vmem:[#allocation27_spill] sm:$0xff]  ;;  %v1719_v14 = vsel %vm1715_vm8, %v3664_v5, %v2823_v52  ;;  %v4349_v62 = vld [vmem:[#allocation30_spill] sm:$0xff]  ;;  %v4350_v13 = vld [vmem:[#allocation28_spill] sm:$0xff]  ;;  %v2833_v52 = vunpack.i.h.bf16 %v4351_v37 }
 0x2a4   : > { %2446 = vmatprep.subr.bf16.mxu1 %v1586_v19  ;;  %v1250_v9 = vsel %vm1248_vm9, %v4346_v60, %v4345_v53  ;;  %v1252_v32 = vsel %vm1248_vm9, %v4350_v13, %v4349_v62  ;;  %v2832_v19 = vunpack.i.l.bf16 %v4351_v37  ;;  %v2925_v53 = vld [vmem:[%s4273_s4 + $0x48] ss:$36 sps:$4 sm:$0xff]  }
 0x2a5   : > { %2447 = vmatpush1.bf16.msra.mxu1 %v1585_v26  ;;  %v4355_v62 = vld [vmem:[#allocation19_spill] sm:$0xff] }
 0x2a6   : > { %2341 = vmatpush1.bf16.msra.mxu0 %v1118_v35  ;;  %2469 = vmatprep.subr.bf16.mxu1 %v1717_v38  ;;  %v4008_v45 = vpop.permute.xlu0 %2875  ;;  %v1251_v38 = vsel %vm1248_vm9, %v2828_v3, %v4350_v13  ;;  %v2842_v13 = vunpack.i.l.bf16 %v4355_v62  ;;  %v1722_v3 = vsel %vm1715_vm8, %v3730_v23, %v3746_v8 }
 0x2a7   : > { %v4015_v27 = vpop.permute.xlu1 %1824  ;;  %2363 = vmatprep.subr.bf16.mxu0 %v1250_v9 }
 0x2a8   : > { %2449 = vmatmul.mubr.bf16.vlgmr.msra.gmra.mrb[0].mxu1 %v2914_v40  ;;  %v4352_v40 = vld [vmem:[#allocation29_spill] sm:$0xff] }
 0x2a9   : > { %2470 = vmatpush1.bf16.msra.mxu1 %v1716_v0  ;;  %2343 = vmatmul.mubr.bf16.vlgmr.msra.gmra.mrb[32].mxu0 %v2917_v44  ;;  %v1718_v35 = vsel %vm1715_vm8, %v4352_v40, %v3664_v5  ;;  %v1721_v44 = vsel %vm1715_vm8, %v3702_v51, %v2832_v19  ;;  %v4353_v5 = vld [vmem:[#allocation31_spill] sm:$0xff]  ;;  %v1720_v0 = vsel %vm1715_vm8, %v3694_v42, %v3702_v51  ;;  %v2838_v51 = vunpack.i.h.bf16 %v4354_v2  ;;  %v4356_v40 = vld [vmem:[#allocation18_spill] sm:$0xff] }
 0x2aa   : > { %2364 = vmatpush1.bf16.msra.mxu0 %v1249_v36  ;;  %2471 = vmatprep.subr.bf16.mxu1 %v1719_v14  ;;  %v4030_v15 = vpop.permute.xlu0 %1365  ;;  %v1254_v9 = vsel %vm1248_vm9, %v4353_v5, %v3704_v56  ;;  %v2931_v56 = vld [vmem:[%s4273_s4 + $0xc] ss:$36 sps:$4 sm:$0xff]   ;;  %v1723_v36 = vsel %vm1715_vm8, %v3746_v8, %v2833_v52  ;;  %v1256_v42 = vsel %vm1248_vm9, %v3728_v46, %v3748_v16 }
 0x2ab   : > { %v4037_v26 = vpop.permute.xlu1 %1367  ;;  %2365 = vmatprep.subr.bf16.mxu0 %v1252_v32  ;;  %2458 = vmatprep.mubr.bf16.mxu1 %v2920_v61  ;;  %v1255_v37 = vsel %vm1248_vm9, %v2838_v51, %v3728_v46  ;;  %v1725_v16 = vsel %vm1715_vm8, %v3782_v34, %v2842_v13  ;;  %v2848_v34 = vunpack.i.h.bf16 %v4356_v40  ;;  %v2872_v51 = vunpack.i.l.bf16 %v3993_v48 }
 0x2ac   : > { %2352 = vmatprep.mubr.bf16.mxu0 %v2922_v58  ;;  %v1253_v58 = vsel %vm1248_vm9, %v2837_v54, %v4353_v5 }
 0x2ad   : > { %2472 = vmatpush1.bf16.msra.mxu1 %v1718_v35  ;;  %v2847_v35 = vunpack.i.l.bf16 %v4356_v40 }
 0x2ae   : > { %2366 = vmatpush1.bf16.msra.mxu0 %v1251_v38  ;;  %2473 = vmatprep.subr.bf16.mxu1 %v1721_v44  ;;  %v4052_v60 = vpop.permute.xlu0 %1832  ;;  %v4357_v44 = vld [vmem:[#allocation21_spill] sm:$0xff] }
 0x2af   : > { %v4059_v61 = vpop.permute.xlu1 %1830  ;;  %2367 = vmatprep.subr.bf16.mxu0 %v1254_v9  ;;  %v1257_v23 = vsel %vm1248_vm9, %v2847_v35, %v3766_v57  ;;  %v1259_v57 = vsel %vm1248_vm9, %v2848_v34, %v3802_v22 }
 0x2b0   : > { %2459 = vmatmul.mubr.bf16.gmra.mrb[4].mxu1 %v2924_v28  ;;  %v2843_v28 = vunpack.i.h.bf16 %v4355_v62 }
 0x2b1   : > { %2474 = vmatpush1.bf16.msra.mxu1 %v1720_v0  ;;  %2353 = vmatmul.mubr.bf16.gmra.mrb[36].mxu0 %v2925_v53  ;;  %v2852_v53 = vunpack.i.l.bf16 %v4357_v44 }
 0x2b2   : > { %2368 = vmatpush1.bf16.msra.mxu0 %v1253_v58  ;;  %2475 = vmatprep.subr.bf16.mxu1 %v1723_v36  ;;  %v4074_v14 = vpop.permute.xlu0 %1371  ;;  %v1727_v46 = vsel %vm1715_vm8, %v3826_v11, %v2843_v28  ;;  %v4358_v11 = vld [vmem:[#allocation20_spill] sm:$0xff]  ;;  %v1395_v58 = vsel %vm1393_vm12, %v3905_v55, %v3925_v10  ;;  %v2863_v36 = vunpack.i.h.bf16 %v3939_v50 }
 0x2b3   : > { %v4081_v32 = vpop.permute.xlu1 %1373  ;;  %2369 = vmatprep.subr.bf16.mxu0 %v1256_v42  ;;  %2501 = vmatprep.mubr.bf16.mxu1 %v2928_v7  ;;  %v2857_v9 = vunpack.i.l.bf16 %v4358_v11  ;;  %v2858_v54 = vunpack.i.h.bf16 %v4358_v11 }
 0x2b4   : > { %2395 = vmatprep.mubr.bf16.mxu0 %v2931_v56  ;;  %v1864_v62 = vsel %vm1860_vm11, %v3959_v1, %v2863_v36  ;;  %v2929_v36 = vld [vmem:[%s4273_s4 + $0x8] ss:$36 sps:$4 sm:$0xff]  }
 0x2b5   : > { %2476 = vmatpush1.bf16.msra.mxu1 %v1722_v3  ;;  %v1261_v22 = vsel %vm1248_vm9, %v2857_v9, %v3846_v6  ;;  %v1263_v0 = vsel %vm1248_vm9, %v2858_v54, %v3896_v25  ;;  %v2868_v3 = vunpack.i.h.bf16 %v3933_v29 }
 0x2b6   : > { %2370 = vmatpush1.bf16.msra.mxu0 %v1255_v37  ;;  %2477 = vmatprep.subr.bf16.mxu1 %v1725_v16  ;;  %v4090_v19 = vpop.permute.xlu0 %1838  ;;  %v1866_v16 = vsel %vm1860_vm11, %v3977_v20, %v2872_v51  ;;  %v2932_v51 = vld [vmem:[%s4273_s4 + $0x54] ss:$36 sps:$4 sm:$0xff]  }
 0x2b7   : > { %v4094_v38 = vpop.permute.xlu1 %2880  ;;  %2371 = vmatprep.subr.bf16.mxu0 %v3792_v47  ;;  %v1396_v37 = vsel %vm1393_vm12, %v2868_v3, %v3947_v33 }
 0x2b9   : > { %2478 = vmatpush1.bf16.msra.mxu1 %v3786_v39  ;;  %v1729_v39 = vsel %vm1715_vm8, %v3868_v24, %v2852_v53 }
 0x2ba   : > { %2372 = vmatpush1.bf16.msra.mxu0 %v1257_v23  ;;  %2479 = vmatprep.subr.bf16.mxu1 %v1727_v46  ;;  %v4102_v8 = vpop.permute.xlu0 %2885 }
 0x2bb   : > { %v4106_v5 = vpop.permute.xlu1 %1836  ;;  %2373 = vmatprep.subr.bf16.mxu0 %v3836_v21  ;;  %v2853_v21 = vunpack.i.h.bf16 %v4357_v44 }
 0x2bd   : > { %2480 = vmatpush1.bf16.msra.mxu1 %v3830_v12  ;;  %v2862_v12 = vunpack.i.l.bf16 %v3939_v50  ;;  %v1397_v50 = vsel %vm1393_vm12, %v3947_v33, %v3965_v41  ;;  %v2873_v41 = vunpack.i.h.bf16 %v3993_v48  ;;  %v1865_v33 = vsel %vm1860_vm11, %v4015_v27, %v3977_v20 }
 0x2be   : > { %2374 = vmatpush1.bf16.msra.mxu0 %v1259_v57  ;;  %2481 = vmatprep.subr.bf16.mxu1 %v1729_v39  ;;  %v4114_v47 = vpop.permute.xlu0 %1377  ;;  %v2878_v48 = vunpack.i.h.bf16 %v4008_v45  ;;  %v1867_v20 = vsel %vm1860_vm11, %v4059_v61, %v4052_v60 }
 0x2bf   : > { %v4117_v2 = vpop.permute.xlu1 %1379  ;;  %2375 = vmatprep.subr.bf16.mxu0 %v3878_v18  ;;  %v1862_v56 = vsel %vm1860_vm11, %v3919_v31, %v2862_v12 }
 0x2c0   : > { %v1400_v27 = vsel %vm1393_vm12, %v2878_v48, %v4030_v15 }
 0x2c1   : > { %2482 = vmatpush1.bf16.msra.mxu1 %v3872_v59  ;;  %v2867_v59 = vunpack.i.l.bf16 %v3933_v29  ;;  %v1399_v29 = vsel %vm1393_vm12, %v3969_v49, %v3983_v30  ;;  %v1401_v30 = vsel %vm1393_vm12, %v4030_v15, %v4037_v26  ;;  %v2883_v26 = vunpack.i.h.bf16 %v4094_v38 }
 0x2c2   : > { %2376 = vmatpush1.bf16.msra.mxu0 %v1261_v22  ;;  %v1712_v24 = vpop.permute.xlu0 %1711  ;;  %v1869_v15 = vsel %vm1860_vm11, %v4106_v5, %v4090_v19 }
 0x2c3   : > { %v1730_v52 = vsel %vm1715_vm8, %v3911_v4, %v1712_v24  ;;  %v1247_v7 = vpop.permute.xlu1 %1246  ;;  %v1731_v18 = vsel %vm1715_vm8, %v1712_v24, %v2853_v21  ;;  %v1394_v13 = vsel %vm1393_vm12, %v2867_v59, %v3905_v55  ;;  %v2877_v55 = vunpack.i.l.bf16 %v4008_v45  ;;  %v2926_v59 = vld [vmem:[%s4273_s4 + $0x18] ss:$36 sps:$4 sm:$0xff]  }
 0x2c4   : > { %2483 = vmatprep.subr.bf16.mxu1 %v1731_v18  ;;  %v1264_v6 = vsel %vm1248_vm9, %v3896_v25, %v1247_v7  ;;  %v1861_v25 = vsel %vm1860_vm11, %v3953_v63, %v3919_v31  ;;  %v1863_v63 = vsel %vm1860_vm11, %v3972_v43, %v3959_v1  ;;  %v2882_v1 = vunpack.i.l.bf16 %v4094_v38 }
 0x2c5   : > { %2377 = vmatprep.subr.bf16.mxu0 %v1264_v6  ;;  %2484 = vmatpush1.bf16.msra.mxu1 %v1730_v52  ;;  %v1868_v43 = vsel %vm1860_vm11, %v4052_v60, %v2873_v41  ;;  %v1398_v28 = vsel %vm1393_vm12, %v2877_v55, %v3969_v49  ;;  %v2887_v49 = vunpack.i.l.bf16 %v4102_v8  ;;  %v1403_v45 = vsel %vm1393_vm12, %v4074_v14, %v4081_v32 }
 0x2c6   : > { %2378 = vmatpush1.bf16.msra.mxu0 %v1263_v0  ;;  %2485 = vmatprep.subr.bf16.mxu1 %v1862_v56  ;;  %v4136_v4 = vpop.permute.xlu0 %1844  ;;  %v1870_v34 = vsel %vm1860_vm11, %v4090_v19, %v2882_v1  ;;  %v1405_v32 = vsel %vm1393_vm12, %v4114_v47, %v4117_v2  ;;  %v2888_v38 = vunpack.i.h.bf16 %v4102_v8 }
 0x2c7   : > { %v4142_v42 = vpop.permute.xlu1 %1842  ;;  %2379 = vmatprep.subr.bf16.mxu0 %v1395_v58  ;;  %v1872_v61 = vsel %vm1860_vm11, %v4136_v4, %v2883_v26  ;;  %v1402_v57 = vsel %vm1393_vm12, %v2887_v49, %v4074_v14 }
 0x2c8   : > { %v1871_v19 = vsel %vm1860_vm11, %v4142_v42, %v4136_v4  ;;  %v1404_v5 = vsel %vm1393_vm12, %v2888_v38, %v4114_v47  ;;  %v2938_v38 = vld [vmem:[%s4273_s4 + $0x20] ss:$36 sps:$4 sm:$0xff]  }
 0x2c9   : > { %2486 = vmatpush1.bf16.msra.mxu1 %v1861_v25 }
 0x2ca   : > { %2487 = vmatprep.subr.bf16.mxu1 %v1864_v62  ;;  %v4152_v10 = vpop.permute.xlu0 %1383  ;;  %2380 = vmatpush1.bf16.msra.mxu0 %v1394_v13  ;;  %v2935_v13 = vld [vmem:[%s4273_s4 + $0x64] ss:$36 sps:$4 sm:$0xff]  }
 0x2cb   : > { %v1386_v31 = vpop.permute.xlu1 %1385  ;;  %2381 = vmatprep.subr.bf16.mxu0 %v1397_v50 }
 0x2cc   : > { %v1407_v2 = vsel %vm1393_vm12, %v4152_v10, %v1386_v31 }
 0x2cd   : > { %2488 = vmatpush1.bf16.msra.mxu1 %v1863_v63 }
 0x2ce   : > { %2489 = vmatprep.subr.bf16.mxu1 %v1866_v16  ;;  %v1851_v40 = vpop.permute.xlu0 %1850  ;;  %2382 = vmatpush1.bf16.msra.mxu0 %v1396_v37  ;;  %v2937_v37 = vld [vmem:[%s4273_s4 + $0x60] ss:$36 sps:$4 sm:$0xff]   ;;  %v2934_v16 = vld [vmem:[%s4273_s4 + $0x50] ss:$36 sps:$4 sm:$0xff]  }
 0x2cf   : > { %v2891_v35 = vpop.permute.xlu1 %2890  ;;  %2383 = vmatprep.subr.bf16.mxu0 %v1399_v29 }
 0x2d0   : > { %v2892_v60 = vunpack.i.l.bf16 %v2891_v35  ;;  %v2893_v8 = vunpack.i.h.bf16 %v2891_v35 }
 0x2d1   : > { %2490 = vmatpush1.bf16.msra.mxu1 %v1865_v33 }
 0x2d2   : > { %2491 = vmatprep.subr.bf16.mxu1 %v1868_v43  ;;  %v2896_v23 = vpop.permute.xlu0 %2895  ;;  %2384 = vmatpush1.bf16.msra.mxu0 %v1398_v28  ;;  %v1874_v14 = vsel %vm1860_vm11, %v1851_v40, %v2892_v60 }
 0x2d3   : > { %v1849_v46 = vpop.permute.xlu1 %1848  ;;  %2385 = vmatprep.subr.bf16.mxu0 %v1401_v30  ;;  %v2897_v9 = vunpack.i.l.bf16 %v2896_v23  ;;  %v2898_v7 = vunpack.i.h.bf16 %v2896_v23 }
 0x2d4   : > { %v1873_v12 = vsel %vm1860_vm11, %v1849_v46, %v1851_v40 }
 0x2d5   : > { %2492 = vmatpush1.bf16.msra.mxu1 %v1867_v20  ;;  %v1406_v47 = vsel %vm1393_vm12, %v2897_v9, %v4152_v10 }
 0x2d6   : > { %2493 = vmatprep.subr.bf16.mxu1 %v1870_v34  ;;  %v1390_v44 = vpop.permute.xlu0 %1389  ;;  %2386 = vmatpush1.bf16.msra.mxu0 %v1400_v27 }
 0x2d7   : > { %v1855_v53 = vpop.permute.xlu1 %1854  ;;  %2387 = vmatprep.subr.bf16.mxu0 %v1403_v45  ;;  %v1408_v56 = vsel %vm1393_vm12, %v2898_v7, %v1390_v44 }
 0x2d9   : > { %2494 = vmatpush1.bf16.msra.mxu1 %v1869_v15 }
 0x2da   : > { %2495 = vmatprep.subr.bf16.mxu1 %v1872_v61  ;;  %v1857_v39 = vpop.permute.xlu0 %1856  ;;  %2388 = vmatpush1.bf16.msra.mxu0 %v1402_v57 }
 0x2db   : > { %v2901_v11 = vpop.permute.xlu1 %2900  ;;  %2389 = vmatprep.subr.bf16.mxu0 %v1405_v32  ;;  %v1876_v54 = vsel %vm1860_vm11, %v1857_v39, %v2893_v8  ;;  %v1875_v6 = vsel %vm1860_vm11, %v1855_v53, %v1857_v39 }
 0x2dc   : > { %v2902_v24 = vunpack.i.l.bf16 %v2901_v11  ;;  %v2903_v4 = vunpack.i.h.bf16 %v2901_v11  ;;  %v2939_v11 = vld [vmem:[%s4273_s4 + $0x68] ss:$36 sps:$4 sm:$0xff]  }
 0x2dd   : > { %2496 = vmatpush1.bf16.msra.mxu1 %v1871_v19 }
 0x2de   : > { %2497 = vmatprep.subr.bf16.mxu1 %v1874_v14  ;;  %v1960_v21 = vpop.permute.xlu0 %1959  ;;  %2390 = vmatpush1.bf16.msra.mxu0 %v1404_v5 }
 0x2df   : > { %v1966_v22 = vpop.permute.xlu1 %1965  ;;  %2391 = vmatprep.subr.bf16.mxu0 %v1407_v2  ;;  %v2007_v58 = vsel %vm2005_vm13, %v1960_v21, %v2902_v24 }
 0x2e0   : > { %v2009_v10 = vsel %vm2005_vm13, %v1966_v22, %v2903_v4 }
 0x2e1   : > { %2498 = vmatpush1.bf16.msra.mxu1 %v1873_v12 }
 0x2e2   : > { %2499 = vmatprep.subr.bf16.mxu1 %v1876_v54  ;;  %v1958_v52 = vpop.permute.xlu0 %1957  ;;  %2392 = vmatpush1.bf16.msra.mxu0 %v1406_v47 }
 0x2e3   : > { %v1392_v18 = vpop.permute.xlu1 %1391  ;;  %v2006_v62 = vsel %vm2005_vm13, %v1958_v52, %v1960_v21 }
 0x2e4   : > { %v1409_v0 = vsel %vm1393_vm12, %v1390_v44, %v1392_v18 }
 0x2e5   : > { %2393 = vmatprep.subr.bf16.mxu0 %v1409_v0  ;;  %2500 = vmatpush1.bf16.msra.mxu1 %v1875_v6 }
 0x2e6   : > { %2687 = vmatprep.subr.bf16.mxu1 %v2007_v58  ;;  %v1964_v42 = vpop.permute.xlu0 %1963  ;;  %2394 = vmatpush1.bf16.msra.mxu0 %v1408_v56 }
 0x2e7   : > { %v1972_v25 = vpop.permute.xlu1 %1971  ;;  %2522 = vmatprep.subr.bf16.mxu0 %v2007_v58  ;;  %v2008_v63 = vsel %vm2005_vm13, %v1964_v42, %v1966_v22 }
 0x2e8   : > { %2502 = vmatmul.mubr.bf16.vlgmr.msra.gmra.mrb[0].mxu1 %v2926_v59 }
 0x2e9   : > { %2396 = vmatmul.mubr.bf16.vlgmr.msra.gmra.mrb[32].mxu0 %v2929_v36  ;;  %2695 = vmatpush1.bf16.msra.mxu1 %v2006_v62 }
 0x2ea   : > { %2688 = vmatprep.subr.bf16.mxu1 %v2009_v10  ;;  %v2906_v50 = vpop.permute.xlu0 %2905  ;;  %2523 = vmatpush1.bf16.msra.mxu0 %v2006_v62 }
 0x2eb   : > { %v2907_v3 = vunpack.i.l.bf16 %v2906_v50  ;;  %v1970_v31 = vpop.permute.xlu1 %1969  ;;  %2524 = vmatprep.subr.bf16.mxu0 %v2009_v10  ;;  %2405 = vmatprep.mubr.bf16.mxu0 %v2932_v51  ;;  %v2908_v29 = vunpack.i.h.bf16 %v2906_v50 }
 0x2ec   : > { %2511 = vmatprep.mubr.bf16.mxu1 %v2935_v13  ;;  %v2010_v35 = vsel %vm2005_vm13, %v1970_v31, %v1972_v25 }
 0x2ed   : > { %2696 = vmatpush1.bf16.msra.mxu1 %v2008_v63  ;;  %v2011_v55 = vsel %vm2005_vm13, %v1972_v25, %v2907_v3 }
 0x2ee   : > { %v1978_v40 = vpop.permute.xlu0 %1977  ;;  %2525 = vmatpush1.bf16.msra.mxu0 %v2008_v63  ;;  %2689 = vmatprep.subr.bf16.mxu1 %v2011_v55 }
 0x2ef   : > { %v1976_v41 = vpop.permute.xlu1 %1975  ;;  %2526 = vmatprep.subr.bf16.mxu0 %v2011_v55  ;;  %v2013_v33 = vsel %vm2005_vm13, %v1978_v40, %v2908_v29 }
 0x2f0   : > { %2512 = vmatmul.mubr.bf16.gmra.mrb[4].mxu1 %v2937_v37  ;;  %v2012_v28 = vsel %vm2005_vm13, %v1976_v41, %v1978_v40 }
 0x2f1   : > { %2406 = vmatmul.mubr.bf16.gmra.mrb[36].mxu0 %v2934_v16  ;;  %2697 = vmatpush1.bf16.msra.mxu1 %v2010_v35 }
 0x2f2   : > { %v1984_v1 = vpop.permute.xlu0 %1983  ;;  %2527 = vmatpush1.bf16.msra.mxu0 %v2010_v35  ;;  %2690 = vmatprep.subr.bf16.mxu1 %v2013_v33 }
 0x2f3   : > { %v2911_v43 = vpop.permute.xlu1 %2910  ;;  %2528 = vmatprep.subr.bf16.mxu0 %v2013_v33  ;;  %2554 = vmatprep.mubr.bf16.mxu0 %v4332_v17 }
 0x2f4   : > { %v2913_v23 = vunpack.i.h.bf16 %v2911_v43  ;;  %v2912_v30 = vunpack.i.l.bf16 %v2911_v43  ;;  %2564 = vmatprep.mubr.bf16.mxu1 %v4332_v17 }
 0x2f5   : > { %2698 = vmatpush1.bf16.msra.mxu1 %v2012_v28 }
 0x2f6   : > { %v1982_v48 = vpop.permute.xlu0 %1981  ;;  %2529 = vmatpush1.bf16.msra.mxu0 %v2012_v28  ;;  %v2015_v46 = vsel %vm2005_vm13, %v1984_v1, %v2912_v30 }
 0x2f7   : > { %v2014_v20 = vsel %vm2005_vm13, %v1982_v48, %v1984_v1  ;;  %v1990_v27 = vpop.permute.xlu1 %1989  ;;  %2530 = vmatprep.subr.bf16.mxu0 %v2015_v46  ;;  %2691 = vmatprep.subr.bf16.mxu1 %v2015_v46 }
 0x2f8   : > { %v2017_v49 = vsel %vm2005_vm13, %v1990_v27, %v2913_v23 }
 0x2f9   : > { %2699 = vmatpush1.bf16.msra.mxu1 %v2014_v20 }
 0x2fa   : > { %v1988_v34 = vpop.permute.xlu0 %1987  ;;  %2531 = vmatpush1.bf16.msra.mxu0 %v2014_v20  ;;  %2692 = vmatprep.subr.bf16.mxu1 %v2017_v49 }
 0x2fb   : > { %v2016_v44 = vsel %vm2005_vm13, %v1988_v34, %v1990_v27  ;;  %v1996_v45 = vpop.permute.xlu1 %1995  ;;  %2532 = vmatprep.subr.bf16.mxu0 %v2017_v49 }
 0x2fd   : > { %2700 = vmatpush1.bf16.msra.mxu1 %v2016_v44 }
 0x2fe   : > { %v1998_v17 = vpop.permute.xlu0 %1997  ;;  %2533 = vmatpush1.bf16.msra.mxu0 %v2016_v44 }
 0x2ff   : > { %v1994_v26 = vpop.permute.xlu1 %1993  ;;  %v2019_v53 = vsel %vm2005_vm13, %v1996_v45, %v1998_v17 }
 0x300   : > { %v2018_v15 = vsel %vm2005_vm13, %v1994_v26, %v1996_v45  ;;  %2534 = vmatprep.subr.bf16.mxu0 %v2019_v53  ;;  %2693 = vmatprep.subr.bf16.mxu1 %v2019_v53 }
 0x301   : > { %2701 = vmatpush1.bf16.msra.mxu1 %v2018_v15 }
 0x302   : > { %v2002_v60 = vpop.permute.xlu0 %2001  ;;  %2535 = vmatpush1.bf16.msra.mxu0 %v2018_v15 }
 0x303   : > { %v2004_v61 = vpop.permute.xlu1 %2003 }
 0x304   : > { %v2021_v57 = vsel %vm2005_vm13, %v2002_v60, %v2004_v61 }
 0x305   : > { %2536 = vmatprep.subr.bf16.mxu0 %v2021_v57  ;;  %2694 = vmatprep.subr.bf16.mxu1 %v2021_v57 }
 0x306   : > { %v2000_v39 = vpop.permute.xlu0 %1999 }
 0x307   : > { %v2020_v32 = vsel %vm2005_vm13, %v2000_v39, %v2002_v60 }
 0x308   : > { %2537 = vmatpush1.bf16.msra.mxu0 %v2020_v32  ;;  %2702 = vmatpush1.bf16.msra.mxu1 %v2020_v32 }
 0x30b   : > { %2555 = vmatmul.mubr.bf16.vlgmr.msra.gmra.mrb[40].mxu0 %v2938_v38  ;;  %2565 = vmatmul.mubr.bf16.vlgmr.msra.gmra.mrb[4].mxu1 %v2939_v11 }
 0x3bb   : > { %v2503_v19 = vpop.f32.mrb[0].mxu1 }
 0x3bc   : > { %v2397_v5 = vpop.f32.mrb[32].mxu0  ;;  %v2505_v9 = vpop.f32.mrb[1].mxu1 }
 0x3bd   : > { %v2703_v14 = vadd.f32 %v2503_v19, %v2397_v5  ;;  %v2399_v21 = vpop.f32.mrb[33].mxu0  ;;  %v2507_v2 = vpop.f32.mrb[2].mxu1 }
 0x3be   : > { %v2705_v8 = vadd.f32 %v2505_v9, %v2399_v21  ;;  %v2401_v22 = vpop.f32.mrb[34].mxu0  ;;  %v2509_v12 = vpop.f32.mrb[3].mxu1 }
 0x3bf   : > { %v2707_v24 = vadd.f32 %v2507_v2, %v2401_v22  ;;  %v2403_v54 = vpop.f32.mrb[35].mxu0 }
 0x3c0   : > { %v2709_v47 = vadd.f32 %v2509_v12, %v2403_v54 }
 0x3c4   : > { %v2407_v52 = vpop.f32.mrb[36].mxu0 }
 0x3c5   : > { %v2409_v7 = vpop.f32.mrb[37].mxu0 }
 0x3c6   : > { %v2411_v18 = vpop.f32.mrb[38].mxu0 }
 0x3c7   : > { %v2413_v6 = vpop.f32.mrb[39].mxu0 }
 0x3de   : > { %v2556_v0 = vpop.f32.mrb[40].mxu0  ;;  %v2566_v59 = vpop.f32.mrb[4].mxu1 }
 0x3df   : > { %v2704_v56 = vadd.f32 %v2703_v14, %v2556_v0  ;;  %v2711_v4 = vadd.f32 %v2566_v59, %v2407_v52  ;;  %v2558_v58 = vpop.f32.mrb[41].mxu0  ;;  %v2568_v36 = vpop.f32.mrb[5].mxu1 }
 0x3e0   : > { %v2706_v42 = vadd.f32 %v2705_v8, %v2558_v58  ;;  %v2712_v25 = vadd.f32 %v2568_v36, %v2409_v7  ;;  %v2560_v51 = vpop.f32.mrb[42].mxu0  ;;  %v2570_v62 = vpop.f32.mrb[6].mxu1 }
 0x3e1   : > { %2575 = vst [vmem:[%s224_s27] sm:$0xff] %v2704_v56  ;;  %2579 = vst [vmem:[%s224_s27 + $0x20] sm:$0xff] %v2711_v4  ;;  %v2708_v13 = vadd.f32 %v2707_v24, %v2560_v51  ;;  %v2713_v10 = vadd.f32 %v2570_v62, %v2411_v18  ;;  %v2562_v50 = vpop.f32.mrb[43].mxu0  ;;  %v2572_v3 = vpop.f32.mrb[7].mxu1 }
 0x3e2   : > { %2576 = vst [vmem:[%s224_s27 + $0x8] sm:$0xff] %v2706_v42  ;;  %2580 = vst [vmem:[%s224_s27 + $0x28] sm:$0xff] %v2712_v25  ;;  %v2710_v31 = vadd.f32 %v2709_v47, %v2562_v50  ;;  %v2714_v63 = vadd.f32 %v2572_v3, %v2413_v6 }
 0x3e3   : > { %2577 = vst [vmem:[%s224_s27 + $0x10] sm:$0xff] %v2708_v13  ;;  %2581 = vst [vmem:[%s224_s27 + $0x30] sm:$0xff] %v2713_v10 }
 0x3e4   : > { %2578 = vst [vmem:[%s224_s27 + $0x18] sm:$0xff] %v2710_v31  ;;  %2582 = vst [vmem:[%s224_s27 + $0x38] sm:$0xff] %v2714_v63 }
 0x3e5 PF: > { %s15_s18 = sadd.s32 1, %s2946_s18  }
 0x3e6   : > { %p12_p4 = scmp.ge.s32.totalorder %s15_s18, 4  }
 0x3e8   :  { %14 = sbr.rel (!%p12_p4) target bundleno = 1 (0x1), region = 70 }

</bundles_post_ra>
